<compile_context>
chip_gen: v7x
topology: tpu7x:2x2x1
jax: 0.10.0
libtpu: 0.0.40
codegen_flags: <defaults>
</compile_context>

<pallas_src>
import jax
import jax.numpy as jnp
from jax.experimental import pallas as pl
from jax.experimental.pallas import tpu as pltpu

NUM_CLASSES = 24
X_FEATS = 4096                  # first input feature width
Y_FEATS = 4200                  # second input feature width
IN_FEATS = X_FEATS + Y_FEATS    # 8296 (multiple of 8 -> aligned split)
N_PAD = 128                     # lane-dense output / weight-column padding
BATCH_TILE = 256                # rows per grid step (sized for v7x 64 MiB VMEM)


def _bow_linear_kernel(x_ref, y_ref, w_ref, b_ref, o_ref):
    """o = concat(x, y) @ W + b  ==  x @ W[:4096] + y @ W[4096:] + b."""
    # Cast activations to bf16 in-kernel (cheap VPU op) -> bf16 x bf16 MXU,
    # f32 accumulation.
    xb = x_ref[...].astype(jnp.bfloat16)
    yb = y_ref[...].astype(jnp.bfloat16)
    # Split the VMEM-resident packed weight; 4096 % 8 == 0 so both views are
    # free (no relayout).
    wx = w_ref[:X_FEATS, :]          # [4096, 128] bf16
    wy = w_ref[X_FEATS:, :]          # [4200, 128] bf16
    acc = jnp.dot(xb, wx, preferred_element_type=jnp.float32)
    acc = acc + jnp.dot(yb, wy, preferred_element_type=jnp.float32)
    # Bias broadcast (1,128) over (tm,128); dense 128-lane f32 store.
    o_ref[...] = acc + b_ref[...]


def vgg16_bow_forward(x, y, w_packed, b_packed, num_classes=NUM_CLASSES):
    """x: [B,4096] f32, y: [B,4200] f32,
    w_packed: [8296,128] bf16 (cols>=24 zero), b_packed: [1,128] f32.
    Returns z: [B, num_classes] f32."""
    B = x.shape[0]
    tm = min(BATCH_TILE, B)
    grid = (pl.cdiv(B, tm),)

    out = pl.pallas_call(
        _bow_linear_kernel,
        out_shape=jax.ShapeDtypeStruct((B, N_PAD), jnp.float32),
        grid=grid,
        in_specs=[
            pl.BlockSpec((tm, X_FEATS), lambda i: (i, 0)),      # x batch tile
            pl.BlockSpec((tm, Y_FEATS), lambda i: (i, 0)),      # y batch tile
            pl.BlockSpec((IN_FEATS, N_PAD), lambda i: (0, 0)),  # weight: VMEM-resident
            pl.BlockSpec((1, N_PAD), lambda i: (0, 0)),         # bias:   VMEM-resident
        ],
        out_specs=pl.BlockSpec((tm, N_PAD), lambda i: (i, 0)),
        compiler_params=pltpu.CompilerParams(
            dimension_semantics=("parallel",),        # shard batch across TCs (v7x)
            vmem_limit_bytes=32 * 1024 * 1024,
        ),
        cost_estimate=pl.CostEstimate(
            flops=2 * B * IN_FEATS * N_PAD,
            transcendentals=0,
            bytes_accessed=(x.size * 4 + y.size * 4 + w_packed.size * 2
                            + b_packed.size * 4 + B * N_PAD * 4),
        ),
    )(x, y, w_packed, b_packed)
    # Lane-dense [B,128] slab -> logical [B, num_classes] (tiny slice, fuses
    # into the consumer under jit).
    return out[:, :num_classes]


def init_params(key, num_classes=NUM_CLASSES):
    """Deterministic init mirroring nn.Linear default U(-1/sqrt(in), 1/sqrt(in)).
    Weight stored as [in_features, out_features] (transpose of PyTorch)."""
    k_w, k_b = jax.random.split(key)
    bound = 1.0 / jnp.sqrt(jnp.float32(IN_FEATS))
    w = jax.random.uniform(k_w, (IN_FEATS, num_classes), jnp.float32, -bound, bound)
    b = jax.random.uniform(k_b, (num_classes,), jnp.float32, -bound, bound)
    return w, b


def pack_params(w, b):
    """One-time layout/dtype prep (outside the hot path):
    w: [8296, 24] f32 -> [8296, 128] bf16 with zero-padded columns;
    b: [24] f32       -> [1, 128] f32 with zero-padded lanes."""
    n_cls = w.shape[1]
    w_packed = jnp.zeros((IN_FEATS, N_PAD), jnp.bfloat16)
    w_packed = w_packed.at[:, :n_cls].set(w.astype(jnp.bfloat16))
    b_packed = jnp.zeros((1, N_PAD), jnp.float32)
    b_packed = b_packed.at[0, :n_cls].set(b.astype(jnp.float32))
    return w_packed, b_packed


if __name__ == "__main__":
    key = jax.random.PRNGKey(0)
    k_x, k_y, k_p = jax.random.split(key, 3)

    B = 2
    x = jax.random.normal(k_x, (B, X_FEATS), jnp.float32)
    y = jax.random.normal(k_y, (B, Y_FEATS), jnp.float32)

    w, b = init_params(k_p)
    w_packed, b_packed = pack_params(w, b)          # one-time prep
    w_packed = jax.block_until_ready(w_packed)

    fwd = jax.jit(vgg16_bow_forward)
    z = fwd(x, y, w_packed, b_packed)
    jax.block_until_ready(z)

    # Pure-JAX f32 reference (cat + linear).  bf16 weights/activations with
    # f32 accumulation -> small, well-bounded deviation from the f32 ref.
    ref = jnp.dot(jnp.concatenate([x, y], axis=1), w,
                  precision=jax.lax.Precision.HIGHEST) + b
    assert z.shape == (B, NUM_CLASSES)
    assert jnp.allclose(z, ref, atol=2e-2, rtol=2e-2), (
        f"max abs err {jnp.max(jnp.abs(z - ref))}")

    print("KERNEL_OK")
</pallas_src>

<mosaic_0001>
module attributes {stable_mosaic.version = 11 : i64} {
  func.func @_bow_linear_kernel(%arg0: i32, %arg1: memref<2x4096xf32, #tpu.memory_space<vmem>>, %arg2: memref<2x4200xf32, #tpu.memory_space<vmem>>, %arg3: memref<8296x128xbf16, #tpu.memory_space<vmem>>, %arg4: memref<1x128xf32, #tpu.memory_space<vmem>>, %arg5: memref<2x128xf32, #tpu.memory_space<vmem>>) attributes {dimension_semantics = [#tpu.dimension_semantics<parallel>], iteration_bounds = array<i64: 1>, scalar_prefetch = 0 : i64, scratch_operands = 0 : i64, tpu.core_type = #tpu.core_type<tc>, window_params = [{transform_indices = @transform_0, window_bounds = array<i64: 2, 4096>}, {transform_indices = @transform_1, window_bounds = array<i64: 2, 4200>}, {pipeline_mode = #tpu.pipeline_mode<synchronous>, transform_indices = @transform_2, window_bounds = array<i64: 8296, 128>}, {pipeline_mode = #tpu.pipeline_mode<synchronous>, transform_indices = @transform_3, window_bounds = array<i64: 1, 128>}, {transform_indices = @transform_4, window_bounds = array<i64: 2, 128>}]} {
    %c0 = arith.constant 0 : index
    %c0_0 = arith.constant 0 : index
    %0 = vector.load %arg1[%c0, %c0_0] : memref<2x4096xf32, #tpu.memory_space<vmem>>, vector<2x4096xf32>
    %1 = arith.truncf %0 : vector<2x4096xf32> to vector<2x4096xbf16>
    %c0_1 = arith.constant 0 : index
    %c0_2 = arith.constant 0 : index
    %2 = vector.load %arg2[%c0_1, %c0_2] : memref<2x4200xf32, #tpu.memory_space<vmem>>, vector<2x4200xf32>
    %3 = arith.truncf %2 : vector<2x4200xf32> to vector<2x4200xbf16>
    %c0_3 = arith.constant 0 : index
    %c0_4 = arith.constant 0 : index
    %4 = vector.load %arg3[%c0_3, %c0_4] : memref<8296x128xbf16, #tpu.memory_space<vmem>>, vector<4096x128xbf16>
    %c4096 = arith.constant 4096 : index
    %c0_5 = arith.constant 0 : index
    %5 = vector.load %arg3[%c4096, %c0_5] : memref<8296x128xbf16, #tpu.memory_space<vmem>>, vector<4200x128xbf16>
    %cst = arith.constant dense<0.000000e+00> : vector<2x128xf32>
    %6 = tpu.matmul %1, %4, %cst {dimension_numbers = #tpu.dot_dimension_numbers<[1], [0], [0], [1], [0, 0, 1, 1], [], []>} : vector<2x4096xbf16>, vector<4096x128xbf16>, vector<2x128xf32> -> vector<2x128xf32>
    %cst_6 = arith.constant dense<0.000000e+00> : vector<2x128xf32>
    %7 = tpu.matmul %3, %5, %cst_6 {dimension_numbers = #tpu.dot_dimension_numbers<[1], [0], [0], [1], [0, 0, 1, 1], [], []>} : vector<2x4200xbf16>, vector<4200x128xbf16>, vector<2x128xf32> -> vector<2x128xf32>
    %8 = arith.addf %6, %7 : vector<2x128xf32>
    %c0_7 = arith.constant 0 : index
    %c0_8 = arith.constant 0 : index
    %9 = vector.load %arg4[%c0_7, %c0_8] : memref<1x128xf32, #tpu.memory_space<vmem>>, vector<1x128xf32>
    %10 = vector.broadcast %9 : vector<1x128xf32> to vector<2x128xf32>
    %11 = arith.addf %8, %10 : vector<2x128xf32>
    %c0_9 = arith.constant 0 : index
    %c0_10 = arith.constant 0 : index
    %12 = vector.load %arg5[%c0_9, %c0_10] : memref<2x128xf32, #tpu.memory_space<vmem>>, vector<2x128xf32>
    tpu.vector_store %arg5[%c0_9, %c0_10], %11 {strides = array<i32>} : memref<2x128xf32, #tpu.memory_space<vmem>>, vector<2x128xf32>,
    return
  }
  func.func @transform_0(%arg0: i32) -> (i32, i32) {
    %c0_i32 = arith.constant 0 : i32
    %c0_i32_0 = arith.constant 0 : i32
    return %arg0, %c0_i32 : i32, i32
  }
  func.func @transform_1(%arg0: i32) -> (i32, i32) {
    %c0_i32 = arith.constant 0 : i32
    %c0_i32_0 = arith.constant 0 : i32
    return %arg0, %c0_i32 : i32, i32
  }
  func.func @transform_2(%arg0: i32) -> (i32, i32) {
    %c0_i32 = arith.constant 0 : i32
    %c0_i32_0 = arith.constant 0 : i32
    %c0_i32_1 = arith.constant 0 : i32
    return %c0_i32, %c0_i32_0 : i32, i32
  }
  func.func @transform_3(%arg0: i32) -> (i32, i32) {
    %c0_i32 = arith.constant 0 : i32
    %c0_i32_0 = arith.constant 0 : i32
    %c0_i32_1 = arith.constant 0 : i32
    return %c0_i32, %c0_i32_0 : i32, i32
  }
  func.func @transform_4(%arg0: i32) -> (i32, i32) {
    %c0_i32 = arith.constant 0 : i32
    %c0_i32_0 = arith.constant 0 : i32
    return %arg0, %c0_i32 : i32, i32
  }
}

</mosaic_0001>

<bundles_post_ra>
// kernel: vgg16_bow_forward.1
= control target key start
LH: loop header
LB: loop body
LE: loop exit
PB: predicated region body
PF: predicated region fallthrough
CT: control target
= control target key end

     0   :  { %9 = vsyncpa [#allocation3], 0  ;;  %s8129_s0 = inlined_call_operand.hbm [shape: f32[2,4096], index: 0, kind: input, shape index: {}]   ;;  %s8130_s1 = inlined_call_operand.hbm [shape: f32[2,4200], index: 1, kind: input, shape index: {}]   ;;  %s8131_s2 = inlined_call_operand.hbm [shape: bf16[8296,128], index: 2, kind: input, shape index: {}]   ;;  %s8132_s3 = inlined_call_operand.hbm [shape: f32[1,128], index: 3, kind: input, shape index: {}]   ;;  %s8133_s4 = inlined_call_operand.hbm [shape: f32[2,128], index: 4, kind: output, shape index: {}]  }
   0x1   :  { %10 = vsyncpa [#allocation6], 0 }
   0x2   :  { %11 = vsyncpa [#allocation9], 0 }
   0x3   :  { %12 = vsyncpa [#allocation4], 0  ;;  %s7928_s15 = smov [#allocation5]   ;;  %s7929_s17 = smov [#allocation2]  }
   0x4   :  { %s29_s16 = sshll.u32 %s7928_s15, 4  ;;  %s19_s18 = sshll.u32 %s7929_s17, 4  ;;  %s30_s16 = int_to_ptr.vmem [resolvable:$true] %s29_s16  ;;  %s20_s18 = int_to_ptr.vmem [resolvable:$true] %s19_s18 }
   0x5   :  { %s7810_s21 = scalar_lea.hbm %s8130_s1, 1056 }
   0x6   :  { %p7811_p0 = scmp.ne.s32.totalorder %s8130_s1, %s7810_s21  ;;  %p7814_p1 = scmp.lt.u32.totalorder %s7810_s21, %s8130_s1 }
   0x8   :  { %p7816_p2 = pnand %p7814_p1, %p7811_p0 }
   0xa   :  { %7819 = shalt.err (!%p7816_p2)
}
   0xb   :  { %s7820_s26 = scalar_lea.vmem %s30_s16, 1056  ;;  %p7825_p4 = scmp.lt.s32.totalorder %s30_s16, %s30_s16 }
   0xc   :  { %p7821_p3 = scmp.ne.s32.totalorder %s30_s16, %s7820_s26  ;;  %p7826_p5 = scmp.lt.s32.totalorder %s7820_s26, %s7820_s26 }
   0xe   :  { %p7827_p6 = por %p7826_p5, %p7825_p4 }
  0x10   :  { %p7828_p7 = pnand %p7827_p6, %p7821_p3 }
  0x12   :  { %7831 = shalt.err (!%p7828_p7)
}
  0x13   :  { %32 = dma.hbm_to_vmem [thread:$0]  %s8130_s1, 1056, %s30_s16, [#allocation6]  }
  0x14   :  { %s7832_s5 = scalar_lea.hbm %s8129_s0, 1024 }
  0x15   :  { %p7833_p8 = scmp.ne.s32.totalorder %s8129_s0, %s7832_s5  ;;  %p7836_p9 = scmp.lt.u32.totalorder %s7832_s5, %s8129_s0 }
  0x17   :  { %p7838_p10 = pnand %p7836_p9, %p7833_p8 }
  0x19   :  { %7841 = shalt.err (!%p7838_p10)
}
  0x1a   :  { %s7842_s10 = scalar_lea.vmem %s20_s18, 1024  ;;  %p7847_p12 = scmp.lt.s32.totalorder %s20_s18, %s20_s18 }
  0x1b   :  { %p7843_p11 = scmp.ne.s32.totalorder %s20_s18, %s7842_s10  ;;  %p7848_p13 = scmp.lt.s32.totalorder %s7842_s10, %s7842_s10 }
  0x1d   :  { %p7849_p0 = por %p7848_p13, %p7847_p12 }
  0x1f   :  { %p7850_p1 = pnand %p7849_p0, %p7843_p11 }
  0x21   :  { %7853 = shalt.err (!%p7850_p1)
}
  0x22   :  { %22 = dma.hbm_to_vmem [thread:$0]  %s8129_s0, 1024, %s20_s18, [#allocation3]  }
  0x23   :  { %s7930_s12 = smov [#allocation7]   ;;  %s7854_s16 = scalar_lea.hbm %s8131_s2, 66368 }
  0x24   :  { %s38_s13 = sshll.u32 %s7930_s12, 4  ;;  %p7855_p2 = scmp.ne.s32.totalorder %s8131_s2, %s7854_s16  ;;  %s39_s13 = int_to_ptr.vmem [resolvable:$true] %s38_s13 }
  0x25   :  { %p7858_p3 = scmp.lt.u32.totalorder %s7854_s16, %s8131_s2 }
  0x27   :  { %p7860_p4 = pnand %p7858_p3, %p7855_p2 }
  0x29   :  { %7863 = shalt.err (!%p7860_p4)
}
  0x2a   :  { %s7864_s22 = scalar_lea.vmem %s39_s13, 66368  ;;  %p7869_p6 = scmp.lt.s32.totalorder %s39_s13, %s39_s13 }
  0x2b   :  { %p7865_p5 = scmp.ne.s32.totalorder %s39_s13, %s7864_s22  ;;  %p7870_p7 = scmp.lt.s32.totalorder %s7864_s22, %s7864_s22 }
  0x2d   :  { %p7871_p8 = por %p7870_p7, %p7869_p6 }
  0x2f   :  { %p7872_p9 = pnand %p7871_p8, %p7865_p5 }
  0x31   :  { %7875 = shalt.err (!%p7872_p9)
}
  0x32   :  { %s7931_s0 = smov 64   ;;  %s7932_s18 = smov 4  }
  0x33   :  { %44 = dma.hbm_to_vmem [thread:$0]  %s8131_s2, 66368, %s39_s13, [#allocation6], %s7931_s0, %s7931_s0, %s7932_s18  }
  0x34   :  { %s7933_s25 = smov [#allocation8]   ;;  %s7876_s29 = scalar_lea.hbm %s8132_s3, 16 }
  0x35   :  { %s51_s26 = sshll.u32 %s7933_s25, 4  ;;  %p7877_p10 = scmp.ne.s32.totalorder %s8132_s3, %s7876_s29  ;;  %s52_s26 = int_to_ptr.vmem [resolvable:$true] %s51_s26 }
  0x36   :  { %p7880_p11 = scmp.lt.u32.totalorder %s7876_s29, %s8132_s3 }
  0x38   :  { %p7882_p12 = pnand %p7880_p11, %p7877_p10 }
  0x3a   :  { %7885 = shalt.err (!%p7882_p12)
}
  0x3b   :  { %s7886_s8 = scalar_lea.vmem %s52_s26, 16  ;;  %s7890_s2 = scalar_lea.vmem %s52_s26, 32 }
  0x3c   :  { %p7887_p13 = scmp.ne.s32.totalorder %s52_s26, %s7886_s8  ;;  %p7891_p0 = scmp.lt.s32.totalorder %s52_s26, %s52_s26 }
  0x3d   :  { %p7892_p1 = scmp.lt.s32.totalorder %s7890_s2, %s7886_s8 }
  0x3f   :  { %p7893_p2 = por %p7892_p1, %p7891_p0 }
  0x41   :  { %p7894_p3 = pnand %p7893_p2, %p7887_p13 }
  0x43   :  { %7897 = shalt.err (!%p7894_p3)
}
  0x44   :  { %54 = dma.hbm_to_vmem [thread:$0]  %s8132_s3, 16, %s52_s26, [#allocation9]  }
  0x45   :  { %7920 = dma.done.wait [#allocation3], 1024  }
  0x46   :  { %7921 = vsyncadd [#allocation3], 4294966272 }
  0x47   :  { %7922 = dma.done.wait [#allocation6], 67424  }
  0x48   :  { %7923 = vsyncadd [#allocation6], 4294899872 }
  0x49   :  { %7924 = dma.done.wait [#allocation9], 16  }
  0x4a   :  { %7925 = vsyncadd [#allocation9], 4294967280  ;;  %v7275_v0 = vld [vmem:[#allocation7 + $0x840] sm:$0xff]   ;;  %v7279_v4 = vld [vmem:[#allocation7 + $0x848] sm:$0xff]   ;;  %v7934_v22 = vmov 1983009808   ;;  %v88_v24 = vlaneseq }
  0x4b   :  { %v7276_v1 = vld [vmem:[#allocation7 + $0x8c0] sm:$0xff]   ;;  %6535 = vmatprep.subr.bf16.mxu0 %v7275_v0  ;;  %v7280_v5 = vld [vmem:[#allocation7 + $0x8c8] sm:$0xff]   ;;  %v7283_v8 = vld [vmem:[#allocation7 + $0x850] sm:$0xff]   ;;  %v86_v23 = vunpack.c.l.s4 %v7934_v22  ;;  %vm7936_vm0 = vmmov 0   ;;  %vm3127_vm1 = vcmask 1043456   ;;  %vm3123_vm2 = vcmask 850944  }
  0x4c   :  { %v7277_v2 = vld [vmem:[#allocation7 + $0x800] sm:$0xff]   ;;  %6557 = vmatprep.subr.bf16.mxu1 %v7276_v1  ;;  %v7281_v6 = vld [vmem:[#allocation7 + $0x808] sm:$0xff]   ;;  %v7284_v9 = vld [vmem:[#allocation7 + $0x8d0] sm:$0xff]   ;;  %v89_v30 = vshrl.u32 %v88_v24, 7  ;;  %s7937_s3 = smov [#allocation10]  }
  0x4d   :  { %v7278_v3 = vld [vmem:[#allocation7 + $0x880] sm:$0xff]   ;;  %6536 = vmatpush3.bf16.msra.mxu0 %v7277_v2  ;;  %v7282_v7 = vld [vmem:[#allocation7 + $0x888] sm:$0xff]   ;;  %v7285_v10 = vld [vmem:[#allocation7 + $0x810] sm:$0xff]   ;;  %v87_v29 = vunpack.c.0.s8 %v86_v23  ;;  %s6002_s1 = sshll.u32 %s7937_s3, 4  ;;  %s6003_s1 = int_to_ptr.vmem [resolvable:$true] %s6002_s1 }
  0x4e   :  { %6558 = vmatpush3.bf16.msra.mxu1 %v7278_v3  ;;  %6537 = vmatprep.subr.bf16.mxu0 %v7279_v4  ;;  %v7286_v11 = vld [vmem:[#allocation7 + $0x890] sm:$0xff]   ;;  %v7287_v12 = vld [vmem:[#allocation7 + $0x858] sm:$0xff]   ;;  %v7291_v16 = vld [vmem:[#allocation7 + $0x860] sm:$0xff]   ;;  %s7898_s11 = scalar_lea.vmem %s6003_s1, 32  ;;  %p7903_p5 = scmp.lt.s32.totalorder %s6003_s1, %s6003_s1 }
  0x4f   :  { %6559 = vmatprep.subr.bf16.mxu1 %v7280_v5  ;;  %v7288_v13 = vld [vmem:[#allocation7 + $0x8d8] sm:$0xff]   ;;  %v7292_v17 = vld [vmem:[#allocation7 + $0x8e0] sm:$0xff]   ;;  %v7295_v20 = vld [vmem:[#allocation7 + $0x868] sm:$0xff]   ;;  %v8011_v35 = vsub.s32 %v87_v29, %v89_v30  ;;  %p7899_p4 = scmp.ne.s32.totalorder %s6003_s1, %s7898_s11  ;;  %p7904_p6 = scmp.lt.s32.totalorder %s7898_s11, %s7898_s11 }
  0x50   :  { %v7289_v14 = vld [vmem:[#allocation7 + $0x818] sm:$0xff]   ;;  %v7293_v18 = vld [vmem:[#allocation7 + $0x820] sm:$0xff]   ;;  %v7296_v21 = vld [vmem:[#allocation7 + $0x8e8] sm:$0xff]  }
  0x51   :  { %6538 = vmatpush3.bf16.msra.mxu0 %v7281_v6  ;;  %v7290_v15 = vld [vmem:[#allocation7 + $0x898] sm:$0xff]   ;;  %v7294_v19 = vld [vmem:[#allocation7 + $0x8a0] sm:$0xff]   ;;  %v7297_v25 = vld [vmem:[#allocation7 + $0x828] sm:$0xff]   ;;  %p7905_p7 = por %p7904_p6, %p7903_p5 }
  0x52   :  { %6560 = vmatpush3.bf16.msra.mxu1 %v7282_v7  ;;  %6539 = vmatprep.subr.bf16.mxu0 %v7283_v8  ;;  %v7298_v26 = vld [vmem:[#allocation7 + $0x8a8] sm:$0xff]   ;;  %v7299_v27 = vld [vmem:[#allocation7 + $0x870] sm:$0xff]   ;;  %v7303_v33 = vld [vmem:[#allocation7 + $0x878] sm:$0xff]  }
  0x53   :  { %6561 = vmatprep.subr.bf16.mxu1 %v7284_v9  ;;  %v7300_v28 = vld [vmem:[#allocation7 + $0x8f0] sm:$0xff]   ;;  %v7304_v34 = vld [vmem:[#allocation7 + $0x8f8] sm:$0xff]   ;;  %v7308_v41 = vld [vmem:[#allocation7 + $0x940] sm:$0xff]   ;;  %p7906_p8 = pnand %p7905_p7, %p7899_p4 }
  0x54   :  { %v7301_v31 = vld [vmem:[#allocation7 + $0x830] sm:$0xff]   ;;  %v7305_v36 = vld [vmem:[#allocation7 + $0x838] sm:$0xff]   ;;  %v7309_v42 = vld [vmem:[#allocation7 + $0x9c0] sm:$0xff]  }
  0x55   :  { %6540 = vmatpush3.bf16.msra.mxu0 %v7285_v10  ;;  %v7302_v32 = vld [vmem:[#allocation7 + $0x8b0] sm:$0xff]   ;;  %v7306_v37 = vld [vmem:[#allocation7 + $0x8b8] sm:$0xff]   ;;  %v7310_v46 = vld [vmem:[#allocation7 + $0x900] sm:$0xff]  }
  0x56   :  { %6562 = vmatpush3.bf16.msra.mxu1 %v7286_v11  ;;  %6541 = vmatprep.subr.bf16.mxu0 %v7287_v12  ;;  %v284_v38 = vld [vmem:[#allocation5] sm:$0xff]  ;;  %v7312_v51 = vld [vmem:[#allocation7 + $0x948] sm:$0xff]   ;;  %v7316_v56 = vld [vmem:[#allocation7 + $0x950] sm:$0xff]  }
  0x57   :  { %6563 = vmatprep.subr.bf16.mxu1 %v7288_v13  ;;  %v309_v39 = vrot.slane %v284_v38, %v8011_v35  ;;  %v302_v40 = vcombine.high %v284_v38, %v284_v38  ;;  %v7311_v49 = vld [vmem:[#allocation7 + $0x980] sm:$0xff]   ;;  %v7313_v53 = vld [vmem:[#allocation7 + $0x9c8] sm:$0xff]   ;;  %v7317_v57 = vld [vmem:[#allocation7 + $0x9d0] sm:$0xff]  }
  0x58   :  { %v7314_v54 = vld [vmem:[#allocation7 + $0x908] sm:$0xff]   ;;  %v7318_v58 = vld [vmem:[#allocation7 + $0x910] sm:$0xff]   ;;  %v7320_v60 = vld [vmem:[#allocation7 + $0x958] sm:$0xff]  }
  0x59   :  { %6542 = vmatpush3.bf16.msra.mxu0 %v7289_v14  ;;  %v317_v43 = vcombine.high %v309_v39, %v309_v39  ;;  %v316_v44 = vrot.slane %v302_v40, %v8011_v35  ;;  %v478_v45 = vpack.c.bf16 %v309_v39, %v309_v39  ;;  %v7315_v55 = vld [vmem:[#allocation7 + $0x988] sm:$0xff]   ;;  %v7319_v59 = vld [vmem:[#allocation7 + $0x990] sm:$0xff]   ;;  %v7321_v61 = vld [vmem:[#allocation7 + $0x9d8] sm:$0xff]  }
  0x5a   :  { %6564 = vmatpush3.bf16.msra.mxu1 %v7290_v15  ;;  %6543 = vmatprep.subr.bf16.mxu0 %v7291_v16  ;;  %v7322_v62 = vld [vmem:[#allocation7 + $0x918] sm:$0xff]   ;;  %v7324_v0 = vld [vmem:[#allocation7 + $0x960] sm:$0xff]   ;;  %v7328_v4 = vld [vmem:[#allocation7 + $0x968] sm:$0xff]  }
  0x5b   :  { %6565 = vmatprep.subr.bf16.mxu1 %v7292_v17  ;;  %v479_v47 = vpack.c.bf16 %v317_v43, %v317_v43  ;;  %v318_v48 = vcombine.high %v316_v44, %v316_v44  ;;  %v480_v50 = vpack.c.bf16 %v316_v44, %v316_v44  ;;  %v7323_v63 = vld [vmem:[#allocation7 + $0x998] sm:$0xff]   ;;  %v7325_v1 = vld [vmem:[#allocation7 + $0x9e0] sm:$0xff]   ;;  %v7329_v5 = vld [vmem:[#allocation7 + $0x9e8] sm:$0xff]  }
  0x5c   :  { %v7326_v2 = vld [vmem:[#allocation7 + $0x920] sm:$0xff]   ;;  %v7330_v6 = vld [vmem:[#allocation7 + $0x928] sm:$0xff]   ;;  %v7332_v8 = vld [vmem:[#allocation7 + $0x970] sm:$0xff]  }
  0x5d   :  { %6544 = vmatpush3.bf16.msra.mxu0 %v7293_v18  ;;  %3163 = vmatprep.mubr.bf16.mxu0 %v479_v47  ;;  %v481_v52 = vpack.c.bf16 %v318_v48, %v318_v48  ;;  %v7327_v3 = vld [vmem:[#allocation7 + $0x9a0] sm:$0xff]   ;;  %v7331_v7 = vld [vmem:[#allocation7 + $0x9a8] sm:$0xff]   ;;  %v7333_v9 = vld [vmem:[#allocation7 + $0x9f0] sm:$0xff]  }
  0x5e   :  { %6566 = vmatpush3.bf16.msra.mxu1 %v7294_v19  ;;  %6545 = vmatprep.subr.bf16.mxu0 %v7295_v20  ;;  %v7334_v10 = vld [vmem:[#allocation7 + $0x930] sm:$0xff]   ;;  %v7336_v12 = vld [vmem:[#allocation7 + $0x978] sm:$0xff]   ;;  %v285_v15 = vld [vmem:[#allocation5 + $0x8] sm:$0xff] }
  0x5f   :  { %6567 = vmatprep.subr.bf16.mxu1 %v7296_v21  ;;  %3203 = vmatprep.mubr.bf16.mxu1 %v481_v52  ;;  %v7335_v11 = vld [vmem:[#allocation7 + $0x9b0] sm:$0xff]   ;;  %v7337_v13 = vld [vmem:[#allocation7 + $0x9f8] sm:$0xff]   ;;  %v326_v17 = vrot.slane %v285_v15, %v8011_v35  ;;  %v319_v18 = vcombine.high %v285_v15, %v285_v15  ;;  %v7341_v19 = vld [vmem:[#allocation7 + $0xa40] sm:$0xff]  }
  0x60   :  { %v7338_v14 = vld [vmem:[#allocation7 + $0x938] sm:$0xff]   ;;  %v7342_v22 = vld [vmem:[#allocation7 + $0xac0] sm:$0xff]   ;;  %v7345_v29 = vld [vmem:[#allocation7 + $0xa48] sm:$0xff]  }
  0x61   :  { %6546 = vmatpush3.bf16.msra.mxu0 %v7297_v25  ;;  %v7339_v16 = vld [vmem:[#allocation7 + $0x9b8] sm:$0xff]   ;;  %v334_v20 = vcombine.high %v326_v17, %v326_v17  ;;  %v333_v21 = vrot.slane %v319_v18, %v8011_v35  ;;  %v482_v23 = vpack.c.bf16 %v326_v17, %v326_v17  ;;  %v7343_v24 = vld [vmem:[#allocation7 + $0xa00] sm:$0xff]   ;;  %v7352_v38 = vld [vmem:[#allocation7 + $0xa90] sm:$0xff]  }
  0x62   :  { %6568 = vmatpush3.bf16.msra.mxu1 %v7298_v26  ;;  %6547 = vmatprep.subr.bf16.mxu0 %v7299_v27  ;;  %v7344_v27 = vld [vmem:[#allocation7 + $0xa80] sm:$0xff]   ;;  %v7353_v39 = vld [vmem:[#allocation7 + $0xa58] sm:$0xff]   ;;  %v7361_v47 = vld [vmem:[#allocation7 + $0xa68] sm:$0xff]  }
  0x63   :  { %6569 = vmatprep.subr.bf16.mxu1 %v7300_v28  ;;  %v483_v25 = vpack.c.bf16 %v334_v20, %v334_v20  ;;  %v335_v26 = vcombine.high %v333_v21, %v333_v21  ;;  %v484_v28 = vpack.c.bf16 %v333_v21, %v333_v21  ;;  %v7354_v40 = vld [vmem:[#allocation7 + $0xad8] sm:$0xff]   ;;  %v7357_v43 = vld [vmem:[#allocation7 + $0xa60] sm:$0xff]   ;;  %v7362_v48 = vld [vmem:[#allocation7 + $0xae8] sm:$0xff]  }
  0x64   :  { %v7358_v44 = vld [vmem:[#allocation7 + $0xae0] sm:$0xff]   ;;  %v7366_v52 = vld [vmem:[#allocation7 + $0xaf0] sm:$0xff]   ;;  %v7386_v17 = vld [vmem:[#allocation7 + $0xb58] sm:$0xff]  }
  0x65   :  { %6548 = vmatpush3.bf16.msra.mxu0 %v7301_v31  ;;  %v485_v30 = vpack.c.bf16 %v335_v26, %v335_v26  ;;  %v7346_v31 = vld [vmem:[#allocation7 + $0xac8] sm:$0xff]   ;;  %v7384_v15 = vld [vmem:[#allocation7 + $0xb10] sm:$0xff]   ;;  %v7387_v18 = vld [vmem:[#allocation7 + $0xbd8] sm:$0xff]  }
  0x66   :  { %6570 = vmatpush3.bf16.msra.mxu1 %v7302_v32  ;;  %6549 = vmatprep.subr.bf16.mxu0 %v7303_v33  ;;  %v7347_v32 = vld [vmem:[#allocation7 + $0xa08] sm:$0xff]   ;;  %v7389_v20 = vld [vmem:[#allocation7 + $0xb98] sm:$0xff]   ;;  %v7390_v21 = vld [vmem:[#allocation7 + $0xb60] sm:$0xff]  }
  0x67   :  { %6571 = vmatprep.subr.bf16.mxu1 %v7304_v34  ;;  %v7348_v33 = vld [vmem:[#allocation7 + $0xa88] sm:$0xff]   ;;  %v7349_v34 = vld [vmem:[#allocation7 + $0xa50] sm:$0xff]  }
  0x68   :  { %v7395_v26 = vld [vmem:[#allocation7 + $0xbe8] sm:$0xff]  }
  0x69   :  { %6550 = vmatpush3.bf16.msra.mxu0 %v7305_v36  ;;  %v7350_v36 = vld [vmem:[#allocation7 + $0xad0] sm:$0xff]  }
  0x6a   :  { %6572 = vmatpush3.bf16.msra.mxu1 %v7306_v37  ;;  %6579 = vmatprep.subr.bf16.mxu0 %v7308_v41  ;;  %v7351_v37 = vld [vmem:[#allocation7 + $0xa10] sm:$0xff]   ;;  %v7355_v41 = vld [vmem:[#allocation7 + $0xa18] sm:$0xff]  }
  0x6b   :  { %6601 = vmatprep.subr.bf16.mxu1 %v7309_v42  ;;  %v7356_v42 = vld [vmem:[#allocation7 + $0xa98] sm:$0xff]  }
  0x6c   :  { %3164 = vmatmul.mubr.bf16.vlgmr.msra.gmra.mrb[0].mxu0 %v478_v45  ;;  %v7359_v45 = vld [vmem:[#allocation7 + $0xa20] sm:$0xff]  }
  0x6d   :  { %6580 = vmatpush3.bf16.msra.mxu0 %v7310_v46  ;;  %3204 = vmatmul.mubr.bf16.vlgmr.msra.gmra.mrb[0].mxu1 %v480_v50  ;;  %v7360_v46 = vld [vmem:[#allocation7 + $0xaa0] sm:$0xff]   ;;  %v7364_v50 = vld [vmem:[#allocation7 + $0xaa8] sm:$0xff]  }
  0x6e   :  { %6581 = vmatprep.subr.bf16.mxu0 %v7312_v51  ;;  %6602 = vmatpush3.bf16.msra.mxu1 %v7311_v49  ;;  %v7363_v49 = vld [vmem:[#allocation7 + $0xa28] sm:$0xff]   ;;  %v7365_v51 = vld [vmem:[#allocation7 + $0xa70] sm:$0xff]  }
  0x6f   :  { %6603 = vmatprep.subr.bf16.mxu1 %v7313_v53  ;;  %3243 = vmatprep.mubr.bf16.mxu0 %v483_v25  ;;  %v7367_v53 = vld [vmem:[#allocation7 + $0xa30] sm:$0xff]   ;;  %v7394_v25 = vld [vmem:[#allocation7 + $0xb68] sm:$0xff]  }
  0x70   :  { %3283 = vmatprep.mubr.bf16.mxu1 %v485_v30  ;;  %v7399_v30 = vld [vmem:[#allocation7 + $0xbf0] sm:$0xff]  }
  0x71   :  { %6582 = vmatpush3.bf16.msra.mxu0 %v7314_v54  ;;  %v7368_v54 = vld [vmem:[#allocation7 + $0xab0] sm:$0xff]  }
  0x72   :  { %6583 = vmatprep.subr.bf16.mxu0 %v7316_v56  ;;  %6604 = vmatpush3.bf16.msra.mxu1 %v7315_v55  ;;  %v7369_v55 = vld [vmem:[#allocation7 + $0xa78] sm:$0xff]  }
  0x73   :  { %6605 = vmatprep.subr.bf16.mxu1 %v7317_v57  ;;  %v7370_v56 = vld [vmem:[#allocation7 + $0xaf8] sm:$0xff]  }
  0x74   :  { %v7371_v57 = vld [vmem:[#allocation7 + $0xa38] sm:$0xff]  }
  0x75   :  { %6584 = vmatpush3.bf16.msra.mxu0 %v7318_v58  ;;  %v286_v58 = vld [vmem:[#allocation5 + $0x10] sm:$0xff] }
  0x76   :  { %6585 = vmatprep.subr.bf16.mxu0 %v7320_v60  ;;  %6606 = vmatpush3.bf16.msra.mxu1 %v7319_v59  ;;  %v7372_v59 = vld [vmem:[#allocation7 + $0xab8] sm:$0xff]   ;;  %v343_v60 = vrot.slane %v286_v58, %v8011_v35 }
  0x77   :  { %6607 = vmatprep.subr.bf16.mxu1 %v7321_v61  ;;  %v336_v61 = vcombine.high %v286_v58, %v286_v58  ;;  %v7417_v58 = vld [vmem:[#allocation7 + $0xc10] sm:$0xff]  }
  0x79   :  { %6586 = vmatpush3.bf16.msra.mxu0 %v7322_v62  ;;  %v7374_v62 = vld [vmem:[#allocation7 + $0xb40] sm:$0xff]  }
  0x7a   :  { %6587 = vmatprep.subr.bf16.mxu0 %v7324_v0  ;;  %6608 = vmatpush3.bf16.msra.mxu1 %v7323_v63  ;;  %v351_v63 = vcombine.high %v343_v60, %v343_v60  ;;  %v350_v0 = vrot.slane %v336_v61, %v8011_v35  ;;  %v7420_v61 = vld [vmem:[#allocation7 + $0xcd8] sm:$0xff]  }
  0x7b   :  { %6609 = vmatprep.subr.bf16.mxu1 %v7325_v1  ;;  %v7375_v1 = vld [vmem:[#allocation7 + $0xbc0] sm:$0xff]  }
  0x7d   :  { %6588 = vmatpush3.bf16.msra.mxu0 %v7326_v2  ;;  %v486_v2 = vpack.c.bf16 %v343_v60, %v343_v60  ;;  %v7419_v60 = vld [vmem:[#allocation7 + $0xc58] sm:$0xff]  }
  0x7e   :  { %6589 = vmatprep.subr.bf16.mxu0 %v7328_v4  ;;  %6610 = vmatpush3.bf16.msra.mxu1 %v7327_v3  ;;  %v7376_v3 = vld [vmem:[#allocation7 + $0xb00] sm:$0xff]   ;;  %v487_v4 = vpack.c.bf16 %v351_v63, %v351_v63  ;;  %v7422_v63 = vld [vmem:[#allocation7 + $0xc98] sm:$0xff]  }
  0x7f   :  { %6611 = vmatprep.subr.bf16.mxu1 %v7329_v5  ;;  %v352_v5 = vcombine.high %v350_v0, %v350_v0 }
  0x81   :  { %6590 = vmatpush3.bf16.msra.mxu0 %v7330_v6  ;;  %v7377_v6 = vld [vmem:[#allocation7 + $0xb80] sm:$0xff]  }
  0x82   :  { %6591 = vmatprep.subr.bf16.mxu0 %v7332_v8  ;;  %6612 = vmatpush3.bf16.msra.mxu1 %v7331_v7  ;;  %v488_v7 = vpack.c.bf16 %v350_v0, %v350_v0  ;;  %v7378_v8 = vld [vmem:[#allocation7 + $0xb48] sm:$0xff]   ;;  %v7423_v0 = vld [vmem:[#allocation7 + $0xc60] sm:$0xff]  }
  0x83   :  { %6613 = vmatprep.subr.bf16.mxu1 %v7333_v9  ;;  %v489_v9 = vpack.c.bf16 %v352_v5, %v352_v5  ;;  %v7428_v5 = vld [vmem:[#allocation7 + $0xce8] sm:$0xff]  }
  0x85   :  { %6592 = vmatpush3.bf16.msra.mxu0 %v7334_v10  ;;  %v7379_v10 = vld [vmem:[#allocation7 + $0xbc8] sm:$0xff]  }
  0x86   :  { %6593 = vmatprep.subr.bf16.mxu0 %v7336_v12  ;;  %6614 = vmatpush3.bf16.msra.mxu1 %v7335_v11  ;;  %v7380_v11 = vld [vmem:[#allocation7 + $0xb08] sm:$0xff]  }
  0x87   :  { %6615 = vmatprep.subr.bf16.mxu1 %v7337_v13  ;;  %v7381_v12 = vld [vmem:[#allocation7 + $0xb88] sm:$0xff]   ;;  %v7382_v13 = vld [vmem:[#allocation7 + $0xb50] sm:$0xff]  }
  0x89   :  { %6594 = vmatpush3.bf16.msra.mxu0 %v7338_v14  ;;  %v7383_v14 = vld [vmem:[#allocation7 + $0xbd0] sm:$0xff]  }
  0x8a   :  { %6623 = vmatprep.subr.bf16.mxu0 %v7341_v19  ;;  %6616 = vmatpush3.bf16.msra.mxu1 %v7339_v16  ;;  %v7385_v16 = vld [vmem:[#allocation7 + $0xb90] sm:$0xff]   ;;  %v7388_v19 = vld [vmem:[#allocation7 + $0xb18] sm:$0xff]  }
  0x8b   :  { %6645 = vmatprep.subr.bf16.mxu1 %v7342_v22  ;;  %v7391_v22 = vld [vmem:[#allocation7 + $0xbe0] sm:$0xff]  }
  0x8c   :  { %3244 = vmatmul.mubr.bf16.vlgmr.msra.gmra.mrb[4].mxu0 %v482_v23  ;;  %v7392_v23 = vld [vmem:[#allocation7 + $0xb20] sm:$0xff]  }
  0x8d   :  { %6624 = vmatpush3.bf16.msra.mxu0 %v7343_v24  ;;  %3284 = vmatmul.mubr.bf16.vlgmr.msra.gmra.mrb[4].mxu1 %v484_v28  ;;  %v7393_v24 = vld [vmem:[#allocation7 + $0xba0] sm:$0xff]   ;;  %v7397_v28 = vld [vmem:[#allocation7 + $0xba8] sm:$0xff]  }
  0x8e   :  { %6625 = vmatprep.subr.bf16.mxu0 %v7345_v29  ;;  %6646 = vmatpush3.bf16.msra.mxu1 %v7344_v27  ;;  %v7396_v27 = vld [vmem:[#allocation7 + $0xb28] sm:$0xff]   ;;  %v7398_v29 = vld [vmem:[#allocation7 + $0xb70] sm:$0xff]  }
  0x8f   :  { %6647 = vmatprep.subr.bf16.mxu1 %v7346_v31  ;;  %3323 = vmatprep.mubr.bf16.mxu0 %v487_v4  ;;  %v7400_v31 = vld [vmem:[#allocation7 + $0xb30] sm:$0xff]   ;;  %v7427_v4 = vld [vmem:[#allocation7 + $0xc68] sm:$0xff]  }
  0x90   :  { %3363 = vmatprep.mubr.bf16.mxu1 %v489_v9  ;;  %v7432_v9 = vld [vmem:[#allocation7 + $0xcf0] sm:$0xff]  }
  0x91   :  { %6626 = vmatpush3.bf16.msra.mxu0 %v7347_v32  ;;  %v7401_v32 = vld [vmem:[#allocation7 + $0xbb0] sm:$0xff]  }
  0x92   :  { %6627 = vmatprep.subr.bf16.mxu0 %v7349_v34  ;;  %6648 = vmatpush3.bf16.msra.mxu1 %v7348_v33  ;;  %v7402_v33 = vld [vmem:[#allocation7 + $0xb78] sm:$0xff]  }
  0x93   :  { %6649 = vmatprep.subr.bf16.mxu1 %v7350_v36  ;;  %v7403_v34 = vld [vmem:[#allocation7 + $0xbf8] sm:$0xff]  }
  0x94   :  { %v7404_v36 = vld [vmem:[#allocation7 + $0xb38] sm:$0xff]  }
  0x95   :  { %6628 = vmatpush3.bf16.msra.mxu0 %v7351_v37  ;;  %v287_v37 = vld [vmem:[#allocation5 + $0x18] sm:$0xff] }
  0x96   :  { %6629 = vmatprep.subr.bf16.mxu0 %v7353_v39  ;;  %6650 = vmatpush3.bf16.msra.mxu1 %v7352_v38  ;;  %v360_v38 = vrot.slane %v287_v37, %v8011_v35  ;;  %v353_v39 = vcombine.high %v287_v37, %v287_v37  ;;  %v7450_v37 = vld [vmem:[#allocation7 + $0xd10] sm:$0xff]  }
  0x97   :  { %6651 = vmatprep.subr.bf16.mxu1 %v7354_v40  ;;  %v7407_v40 = vld [vmem:[#allocation7 + $0xc40] sm:$0xff]  }
  0x99   :  { %6630 = vmatpush3.bf16.msra.mxu0 %v7355_v41  ;;  %v7405_v41 = vld [vmem:[#allocation7 + $0xbb8] sm:$0xff]  }
  0x9a   :  { %6631 = vmatprep.subr.bf16.mxu0 %v7357_v43  ;;  %6652 = vmatpush3.bf16.msra.mxu1 %v7356_v42  ;;  %v368_v42 = vcombine.high %v360_v38, %v360_v38  ;;  %v367_v43 = vrot.slane %v353_v39, %v8011_v35  ;;  %v7452_v39 = vld [vmem:[#allocation7 + $0xd58] sm:$0xff]  }
  0x9b   :  { %6653 = vmatprep.subr.bf16.mxu1 %v7358_v44  ;;  %v7408_v44 = vld [vmem:[#allocation7 + $0xcc0] sm:$0xff]  }
  0x9d   :  { %6632 = vmatpush3.bf16.msra.mxu0 %v7359_v45  ;;  %v490_v45 = vpack.c.bf16 %v360_v38, %v360_v38  ;;  %v7451_v38 = vld [vmem:[#allocation7 + $0xd90] sm:$0xff]  }
  0x9e   :  { %6633 = vmatprep.subr.bf16.mxu0 %v7361_v47  ;;  %6654 = vmatpush3.bf16.msra.mxu1 %v7360_v46  ;;  %v7409_v46 = vld [vmem:[#allocation7 + $0xc00] sm:$0xff]   ;;  %v491_v47 = vpack.c.bf16 %v368_v42, %v368_v42  ;;  %v7455_v42 = vld [vmem:[#allocation7 + $0xd98] sm:$0xff]  }
  0x9f   :  { %6655 = vmatprep.subr.bf16.mxu1 %v7362_v48  ;;  %v369_v48 = vcombine.high %v367_v43, %v367_v43 }
  0xa1   :  { %6634 = vmatpush3.bf16.msra.mxu0 %v7363_v49  ;;  %v7410_v49 = vld [vmem:[#allocation7 + $0xc80] sm:$0xff]  }
  0xa2   :  { %6635 = vmatprep.subr.bf16.mxu0 %v7365_v51  ;;  %6656 = vmatpush3.bf16.msra.mxu1 %v7364_v50  ;;  %v492_v50 = vpack.c.bf16 %v367_v43, %v367_v43  ;;  %v7411_v51 = vld [vmem:[#allocation7 + $0xc48] sm:$0xff]   ;;  %v7456_v43 = vld [vmem:[#allocation7 + $0xd60] sm:$0xff]  }
  0xa3   :  { %6657 = vmatprep.subr.bf16.mxu1 %v7366_v52  ;;  %v493_v52 = vpack.c.bf16 %v369_v48, %v369_v48  ;;  %v7461_v48 = vld [vmem:[#allocation7 + $0xde8] sm:$0xff]  }
  0xa5   :  { %6636 = vmatpush3.bf16.msra.mxu0 %v7367_v53  ;;  %v7412_v53 = vld [vmem:[#allocation7 + $0xcc8] sm:$0xff]  }
  0xa6   :  { %6637 = vmatprep.subr.bf16.mxu0 %v7369_v55  ;;  %6658 = vmatpush3.bf16.msra.mxu1 %v7368_v54  ;;  %v7413_v54 = vld [vmem:[#allocation7 + $0xc08] sm:$0xff]  }
  0xa7   :  { %6659 = vmatprep.subr.bf16.mxu1 %v7370_v56  ;;  %v7414_v55 = vld [vmem:[#allocation7 + $0xc88] sm:$0xff]   ;;  %v7415_v56 = vld [vmem:[#allocation7 + $0xc50] sm:$0xff]  }
  0xa9   :  { %6638 = vmatpush3.bf16.msra.mxu0 %v7371_v57  ;;  %v7416_v57 = vld [vmem:[#allocation7 + $0xcd0] sm:$0xff]  }
  0xaa   :  { %6667 = vmatprep.subr.bf16.mxu0 %v7374_v62  ;;  %6660 = vmatpush3.bf16.msra.mxu1 %v7372_v59  ;;  %v7418_v59 = vld [vmem:[#allocation7 + $0xc90] sm:$0xff]   ;;  %v7421_v62 = vld [vmem:[#allocation7 + $0xc18] sm:$0xff]  }
  0xab   :  { %6689 = vmatprep.subr.bf16.mxu1 %v7375_v1  ;;  %v7424_v1 = vld [vmem:[#allocation7 + $0xce0] sm:$0xff]  }
  0xac   :  { %3324 = vmatmul.mubr.bf16.vlgmr.msra.gmra.mrb[8].mxu0 %v486_v2  ;;  %v7425_v2 = vld [vmem:[#allocation7 + $0xc20] sm:$0xff]  }
  0xad   :  { %6668 = vmatpush3.bf16.msra.mxu0 %v7376_v3  ;;  %3364 = vmatmul.mubr.bf16.vlgmr.msra.gmra.mrb[8].mxu1 %v488_v7  ;;  %v7426_v3 = vld [vmem:[#allocation7 + $0xca0] sm:$0xff]   ;;  %v7430_v7 = vld [vmem:[#allocation7 + $0xca8] sm:$0xff]  }
  0xae   :  { %6669 = vmatprep.subr.bf16.mxu0 %v7378_v8  ;;  %6690 = vmatpush3.bf16.msra.mxu1 %v7377_v6  ;;  %v7429_v6 = vld [vmem:[#allocation7 + $0xc28] sm:$0xff]   ;;  %v7431_v8 = vld [vmem:[#allocation7 + $0xc70] sm:$0xff]  }
  0xaf   :  { %6691 = vmatprep.subr.bf16.mxu1 %v7379_v10  ;;  %3403 = vmatprep.mubr.bf16.mxu0 %v491_v47  ;;  %v7433_v10 = vld [vmem:[#allocation7 + $0xc30] sm:$0xff]   ;;  %v7460_v47 = vld [vmem:[#allocation7 + $0xd68] sm:$0xff]  }
  0xb0   :  { %3443 = vmatprep.mubr.bf16.mxu1 %v493_v52  ;;  %v7465_v52 = vld [vmem:[#allocation7 + $0xdf0] sm:$0xff]  }
  0xb1   :  { %6670 = vmatpush3.bf16.msra.mxu0 %v7380_v11  ;;  %v7434_v11 = vld [vmem:[#allocation7 + $0xcb0] sm:$0xff]  }
  0xb2   :  { %6671 = vmatprep.subr.bf16.mxu0 %v7382_v13  ;;  %6692 = vmatpush3.bf16.msra.mxu1 %v7381_v12  ;;  %v7435_v12 = vld [vmem:[#allocation7 + $0xc78] sm:$0xff]  }
  0xb3   :  { %6693 = vmatprep.subr.bf16.mxu1 %v7383_v14  ;;  %v7436_v13 = vld [vmem:[#allocation7 + $0xcf8] sm:$0xff]  }
  0xb4   :  { %v7437_v14 = vld [vmem:[#allocation7 + $0xc38] sm:$0xff]  }
  0xb5   :  { %6672 = vmatpush3.bf16.msra.mxu0 %v7384_v15  ;;  %v288_v15 = vld [vmem:[#allocation5 + $0x20] sm:$0xff] }
  0xb6   :  { %6673 = vmatprep.subr.bf16.mxu0 %v7386_v17  ;;  %6694 = vmatpush3.bf16.msra.mxu1 %v7385_v16  ;;  %v7438_v16 = vld [vmem:[#allocation7 + $0xcb8] sm:$0xff]   ;;  %v377_v17 = vrot.slane %v288_v15, %v8011_v35 }
  0xb7   :  { %6695 = vmatprep.subr.bf16.mxu1 %v7387_v18  ;;  %v370_v18 = vcombine.high %v288_v15, %v288_v15  ;;  %v7483_v15 = vld [vmem:[#allocation7 + $0xe10] sm:$0xff]  }
  0xb9   :  { %6674 = vmatpush3.bf16.msra.mxu0 %v7388_v19  ;;  %v7440_v19 = vld [vmem:[#allocation7 + $0xd40] sm:$0xff]  }
  0xba   :  { %6675 = vmatprep.subr.bf16.mxu0 %v7390_v21  ;;  %6696 = vmatpush3.bf16.msra.mxu1 %v7389_v20  ;;  %v385_v20 = vcombine.high %v377_v17, %v377_v17  ;;  %v384_v21 = vrot.slane %v370_v18, %v8011_v35  ;;  %v7486_v18 = vld [vmem:[#allocation7 + $0xed8] sm:$0xff]  }
  0xbb   :  { %6697 = vmatprep.subr.bf16.mxu1 %v7391_v22  ;;  %v7441_v22 = vld [vmem:[#allocation7 + $0xdc0] sm:$0xff]  }
  0xbd   :  { %6676 = vmatpush3.bf16.msra.mxu0 %v7392_v23  ;;  %v494_v23 = vpack.c.bf16 %v377_v17, %v377_v17  ;;  %v7485_v17 = vld [vmem:[#allocation7 + $0xe58] sm:$0xff]  }
  0xbe   :  { %6677 = vmatprep.subr.bf16.mxu0 %v7394_v25  ;;  %6698 = vmatpush3.bf16.msra.mxu1 %v7393_v24  ;;  %v7442_v24 = vld [vmem:[#allocation7 + $0xd00] sm:$0xff]   ;;  %v495_v25 = vpack.c.bf16 %v385_v20, %v385_v20  ;;  %v7488_v20 = vld [vmem:[#allocation7 + $0xe98] sm:$0xff]  }
  0xbf   :  { %6699 = vmatprep.subr.bf16.mxu1 %v7395_v26  ;;  %v386_v26 = vcombine.high %v384_v21, %v384_v21 }
  0xc1   :  { %6678 = vmatpush3.bf16.msra.mxu0 %v7396_v27  ;;  %v7443_v27 = vld [vmem:[#allocation7 + $0xd80] sm:$0xff]  }
  0xc2   :  { %6679 = vmatprep.subr.bf16.mxu0 %v7398_v29  ;;  %6700 = vmatpush3.bf16.msra.mxu1 %v7397_v28  ;;  %v496_v28 = vpack.c.bf16 %v384_v21, %v384_v21  ;;  %v7444_v29 = vld [vmem:[#allocation7 + $0xd48] sm:$0xff]   ;;  %v7489_v21 = vld [vmem:[#allocation7 + $0xe60] sm:$0xff]  }
  0xc3   :  { %6701 = vmatprep.subr.bf16.mxu1 %v7399_v30  ;;  %v497_v30 = vpack.c.bf16 %v386_v26, %v386_v26  ;;  %v7494_v26 = vld [vmem:[#allocation7 + $0xee8] sm:$0xff]  }
  0xc5   :  { %6680 = vmatpush3.bf16.msra.mxu0 %v7400_v31  ;;  %v7445_v31 = vld [vmem:[#allocation7 + $0xdc8] sm:$0xff]  }
  0xc6   :  { %6681 = vmatprep.subr.bf16.mxu0 %v7402_v33  ;;  %6702 = vmatpush3.bf16.msra.mxu1 %v7401_v32  ;;  %v7446_v32 = vld [vmem:[#allocation7 + $0xd08] sm:$0xff]  }
  0xc7   :  { %6703 = vmatprep.subr.bf16.mxu1 %v7403_v34  ;;  %v7447_v33 = vld [vmem:[#allocation7 + $0xd88] sm:$0xff]   ;;  %v7448_v34 = vld [vmem:[#allocation7 + $0xd50] sm:$0xff]  }
  0xc9   :  { %6682 = vmatpush3.bf16.msra.mxu0 %v7404_v36  ;;  %v7449_v36 = vld [vmem:[#allocation7 + $0xdd0] sm:$0xff]  }
  0xca   :  { %6711 = vmatprep.subr.bf16.mxu0 %v7407_v40  ;;  %6704 = vmatpush3.bf16.msra.mxu1 %v7405_v41  ;;  %v7453_v40 = vld [vmem:[#allocation7 + $0xdd8] sm:$0xff]  }
  0xcb   :  { %6733 = vmatprep.subr.bf16.mxu1 %v7408_v44  ;;  %v7454_v41 = vld [vmem:[#allocation7 + $0xd18] sm:$0xff]   ;;  %v7457_v44 = vld [vmem:[#allocation7 + $0xde0] sm:$0xff]  }
  0xcc   :  { %3404 = vmatmul.mubr.bf16.vlgmr.msra.gmra.mrb[12].mxu0 %v490_v45  ;;  %v7458_v45 = vld [vmem:[#allocation7 + $0xd20] sm:$0xff]  }
  0xcd   :  { %6712 = vmatpush3.bf16.msra.mxu0 %v7409_v46  ;;  %3444 = vmatmul.mubr.bf16.vlgmr.msra.gmra.mrb[12].mxu1 %v492_v50  ;;  %v7459_v46 = vld [vmem:[#allocation7 + $0xda0] sm:$0xff]   ;;  %v7463_v50 = vld [vmem:[#allocation7 + $0xda8] sm:$0xff]  }
  0xce   :  { %6713 = vmatprep.subr.bf16.mxu0 %v7411_v51  ;;  %6734 = vmatpush3.bf16.msra.mxu1 %v7410_v49  ;;  %v7462_v49 = vld [vmem:[#allocation7 + $0xd28] sm:$0xff]   ;;  %v7464_v51 = vld [vmem:[#allocation7 + $0xd70] sm:$0xff]  }
  0xcf   :  { %6735 = vmatprep.subr.bf16.mxu1 %v7412_v53  ;;  %3483 = vmatprep.mubr.bf16.mxu0 %v495_v25  ;;  %v7466_v53 = vld [vmem:[#allocation7 + $0xd30] sm:$0xff]   ;;  %v7493_v25 = vld [vmem:[#allocation7 + $0xe68] sm:$0xff]  }
  0xd0   :  { %3523 = vmatprep.mubr.bf16.mxu1 %v497_v30  ;;  %v7498_v30 = vld [vmem:[#allocation7 + $0xef0] sm:$0xff]  }
  0xd1   :  { %6714 = vmatpush3.bf16.msra.mxu0 %v7413_v54  ;;  %v7467_v54 = vld [vmem:[#allocation7 + $0xdb0] sm:$0xff]  }
  0xd2   :  { %6715 = vmatprep.subr.bf16.mxu0 %v7415_v56  ;;  %6736 = vmatpush3.bf16.msra.mxu1 %v7414_v55  ;;  %v7468_v55 = vld [vmem:[#allocation7 + $0xd78] sm:$0xff]  }
  0xd3   :  { %6737 = vmatprep.subr.bf16.mxu1 %v7416_v57  ;;  %v7469_v56 = vld [vmem:[#allocation7 + $0xdf8] sm:$0xff]  }
  0xd4   :  { %v7470_v57 = vld [vmem:[#allocation7 + $0xd38] sm:$0xff]  }
  0xd5   :  { %6716 = vmatpush3.bf16.msra.mxu0 %v7417_v58  ;;  %v289_v58 = vld [vmem:[#allocation5 + $0x28] sm:$0xff] }
  0xd6   :  { %6717 = vmatprep.subr.bf16.mxu0 %v7419_v60  ;;  %6738 = vmatpush3.bf16.msra.mxu1 %v7418_v59  ;;  %v7471_v59 = vld [vmem:[#allocation7 + $0xdb8] sm:$0xff]   ;;  %v394_v60 = vrot.slane %v289_v58, %v8011_v35 }
  0xd7   :  { %6739 = vmatprep.subr.bf16.mxu1 %v7420_v61  ;;  %v387_v61 = vcombine.high %v289_v58, %v289_v58  ;;  %v7516_v58 = vld [vmem:[#allocation7 + $0xf10] sm:$0xff]  }
  0xd9   :  { %6718 = vmatpush3.bf16.msra.mxu0 %v7421_v62  ;;  %v7473_v62 = vld [vmem:[#allocation7 + $0xe40] sm:$0xff]  }
  0xda   :  { %6719 = vmatprep.subr.bf16.mxu0 %v7423_v0  ;;  %6740 = vmatpush3.bf16.msra.mxu1 %v7422_v63  ;;  %v402_v63 = vcombine.high %v394_v60, %v394_v60  ;;  %v401_v0 = vrot.slane %v387_v61, %v8011_v35  ;;  %v7519_v61 = vld [vmem:[#allocation7 + $0xfd8] sm:$0xff]  }
  0xdb   :  { %6741 = vmatprep.subr.bf16.mxu1 %v7424_v1  ;;  %v7474_v1 = vld [vmem:[#allocation7 + $0xec0] sm:$0xff]  }
  0xdd   :  { %6720 = vmatpush3.bf16.msra.mxu0 %v7425_v2  ;;  %v498_v2 = vpack.c.bf16 %v394_v60, %v394_v60  ;;  %v7517_v60 = vld [vmem:[#allocation7 + $0xf90] sm:$0xff]  }
  0xde   :  { %6721 = vmatprep.subr.bf16.mxu0 %v7427_v4  ;;  %6742 = vmatpush3.bf16.msra.mxu1 %v7426_v3  ;;  %v7475_v3 = vld [vmem:[#allocation7 + $0xe00] sm:$0xff]   ;;  %v499_v4 = vpack.c.bf16 %v402_v63, %v402_v63 }
  0xdf   :  { %6743 = vmatprep.subr.bf16.mxu1 %v7428_v5  ;;  %v403_v5 = vcombine.high %v401_v0, %v401_v0  ;;  %v7522_v63 = vld [vmem:[#allocation7 + $0xf60] sm:$0xff]  }
  0xe1   :  { %6722 = vmatpush3.bf16.msra.mxu0 %v7429_v6  ;;  %v7476_v6 = vld [vmem:[#allocation7 + $0xe80] sm:$0xff]  }
  0xe2   :  { %6723 = vmatprep.subr.bf16.mxu0 %v7431_v8  ;;  %6744 = vmatpush3.bf16.msra.mxu1 %v7430_v7  ;;  %v500_v7 = vpack.c.bf16 %v401_v0, %v401_v0  ;;  %v7477_v8 = vld [vmem:[#allocation7 + $0xe48] sm:$0xff]   ;;  %v7521_v0 = vld [vmem:[#allocation7 + $0xf98] sm:$0xff]  }
  0xe3   :  { %6745 = vmatprep.subr.bf16.mxu1 %v7432_v9  ;;  %v501_v9 = vpack.c.bf16 %v403_v5, %v403_v5  ;;  %v7527_v5 = vld [vmem:[#allocation7 + $0xfe8] sm:$0xff]  }
  0xe5   :  { %6724 = vmatpush3.bf16.msra.mxu0 %v7433_v10  ;;  %v7478_v10 = vld [vmem:[#allocation7 + $0xec8] sm:$0xff]  }
  0xe6   :  { %6725 = vmatprep.subr.bf16.mxu0 %v7435_v12  ;;  %6746 = vmatpush3.bf16.msra.mxu1 %v7434_v11  ;;  %v7479_v11 = vld [vmem:[#allocation7 + $0xe08] sm:$0xff]  }
  0xe7   :  { %6747 = vmatprep.subr.bf16.mxu1 %v7436_v13  ;;  %v7480_v12 = vld [vmem:[#allocation7 + $0xe88] sm:$0xff]   ;;  %v7481_v13 = vld [vmem:[#allocation7 + $0xe50] sm:$0xff]  }
  0xe9   :  { %6726 = vmatpush3.bf16.msra.mxu0 %v7437_v14  ;;  %v7482_v14 = vld [vmem:[#allocation7 + $0xed0] sm:$0xff]  }
  0xea   :  { %6755 = vmatprep.subr.bf16.mxu0 %v7440_v19  ;;  %6748 = vmatpush3.bf16.msra.mxu1 %v7438_v16  ;;  %v7484_v16 = vld [vmem:[#allocation7 + $0xe90] sm:$0xff]   ;;  %v7487_v19 = vld [vmem:[#allocation7 + $0xe18] sm:$0xff]  }
  0xeb   :  { %6777 = vmatprep.subr.bf16.mxu1 %v7441_v22  ;;  %v7490_v22 = vld [vmem:[#allocation7 + $0xee0] sm:$0xff]  }
  0xec   :  { %3484 = vmatmul.mubr.bf16.vlgmr.msra.gmra.mrb[16].mxu0 %v494_v23  ;;  %v7491_v23 = vld [vmem:[#allocation7 + $0xe20] sm:$0xff]  }
  0xed   :  { %6756 = vmatpush3.bf16.msra.mxu0 %v7442_v24  ;;  %3524 = vmatmul.mubr.bf16.vlgmr.msra.gmra.mrb[16].mxu1 %v496_v28  ;;  %v7492_v24 = vld [vmem:[#allocation7 + $0xea0] sm:$0xff]   ;;  %v7496_v28 = vld [vmem:[#allocation7 + $0xea8] sm:$0xff]  }
  0xee   :  { %6757 = vmatprep.subr.bf16.mxu0 %v7444_v29  ;;  %6778 = vmatpush3.bf16.msra.mxu1 %v7443_v27  ;;  %v7495_v27 = vld [vmem:[#allocation7 + $0xe28] sm:$0xff]   ;;  %v7497_v29 = vld [vmem:[#allocation7 + $0xe70] sm:$0xff]  }
  0xef   :  { %6779 = vmatprep.subr.bf16.mxu1 %v7445_v31  ;;  %3563 = vmatprep.mubr.bf16.mxu0 %v499_v4  ;;  %v7499_v31 = vld [vmem:[#allocation7 + $0xe30] sm:$0xff]   ;;  %v7525_v4 = vld [vmem:[#allocation7 + $0xfa0] sm:$0xff]  }
  0xf0   :  { %3603 = vmatprep.mubr.bf16.mxu1 %v501_v9  ;;  %v7530_v9 = vld [vmem:[#allocation7 + $0xf70] sm:$0xff]  }
  0xf1   :  { %6758 = vmatpush3.bf16.msra.mxu0 %v7446_v32  ;;  %v7500_v32 = vld [vmem:[#allocation7 + $0xeb0] sm:$0xff]  }
  0xf2   :  { %6759 = vmatprep.subr.bf16.mxu0 %v7448_v34  ;;  %6780 = vmatpush3.bf16.msra.mxu1 %v7447_v33  ;;  %v7501_v33 = vld [vmem:[#allocation7 + $0xe78] sm:$0xff]  }
  0xf3   :  { %6781 = vmatprep.subr.bf16.mxu1 %v7449_v36  ;;  %v7502_v34 = vld [vmem:[#allocation7 + $0xef8] sm:$0xff]  }
  0xf4   :  { %v7503_v36 = vld [vmem:[#allocation7 + $0xe38] sm:$0xff]  }
  0xf5   :  { %6760 = vmatpush3.bf16.msra.mxu0 %v7450_v37  ;;  %v290_v37 = vld [vmem:[#allocation5 + $0x30] sm:$0xff] }
  0xf6   :  { %6761 = vmatprep.subr.bf16.mxu0 %v7452_v39  ;;  %6782 = vmatpush3.bf16.msra.mxu1 %v7451_v38  ;;  %v411_v38 = vrot.slane %v290_v37, %v8011_v35  ;;  %v404_v39 = vcombine.high %v290_v37, %v290_v37  ;;  %v7540_v37 = vld [vmem:[#allocation7 + $0x1000] sm:$0xff]  }
  0xf7   :  { %6783 = vmatprep.subr.bf16.mxu1 %v7453_v40  ;;  %v7506_v40 = vld [vmem:[#allocation7 + $0xf40] sm:$0xff]  }
  0xf9   :  { %6762 = vmatpush3.bf16.msra.mxu0 %v7454_v41  ;;  %v7504_v41 = vld [vmem:[#allocation7 + $0xeb8] sm:$0xff]  }
  0xfa   :  { %6763 = vmatprep.subr.bf16.mxu0 %v7456_v43  ;;  %6784 = vmatpush3.bf16.msra.mxu1 %v7455_v42  ;;  %v419_v42 = vcombine.high %v411_v38, %v411_v38  ;;  %v418_v43 = vrot.slane %v404_v39, %v8011_v35 }
  0xfb   :  { %6785 = vmatprep.subr.bf16.mxu1 %v7457_v44  ;;  %v7507_v44 = vld [vmem:[#allocation7 + $0xfc0] sm:$0xff]  }
  0xfd   :  { %6764 = vmatpush3.bf16.msra.mxu0 %v7458_v45  ;;  %v502_v45 = vpack.c.bf16 %v411_v38, %v411_v38  ;;  %v7935_v38 = vmov 0.0  }
  0xfe   :  { %6765 = vmatprep.subr.bf16.mxu0 %v7460_v47  ;;  %6786 = vmatpush3.bf16.msra.mxu1 %v7459_v46  ;;  %v503_v46 = vpack.c.bf16 %v419_v42, %v419_v42  ;;  %v420_v47 = vcombine.high %v418_v43, %v418_v43  ;;  %v7542_v42 = vld [vmem:[#allocation7 + $0x48] sm:$0xff]  }
  0xff   :  { %6787 = vmatprep.subr.bf16.mxu1 %v7461_v48  ;;  %v7508_v48 = vld [vmem:[#allocation7 + $0xf00] sm:$0xff]  }
 0x101   :  { %6766 = vmatpush3.bf16.msra.mxu0 %v7462_v49  ;;  %v504_v49 = vpack.c.bf16 %v418_v43, %v418_v43  ;;  %v7543_v43 = vld [vmem:[#allocation7 + $0x1008] sm:$0xff]  }
 0x102   :  { %6767 = vmatprep.subr.bf16.mxu0 %v7464_v51  ;;  %6788 = vmatpush3.bf16.msra.mxu1 %v7463_v50  ;;  %v7510_v50 = vld [vmem:[#allocation7 + $0xf48] sm:$0xff]   ;;  %v505_v51 = vpack.c.bf16 %v420_v47, %v420_v47  ;;  %v7547_v47 = vld [vmem:[#allocation7 + $0x10] sm:$0xff]  }
 0x103   :  { %6789 = vmatprep.subr.bf16.mxu1 %v7465_v52  ;;  %v7509_v52 = vld [vmem:[#allocation7 + $0xf80] sm:$0xff]  }
 0x105   :  { %6768 = vmatpush3.bf16.msra.mxu0 %v7466_v53  ;;  %v7511_v53 = vld [vmem:[#allocation7 + $0xfc8] sm:$0xff]  }
 0x106   :  { %6769 = vmatprep.subr.bf16.mxu0 %v7468_v55  ;;  %6790 = vmatpush3.bf16.msra.mxu1 %v7467_v54  ;;  %v7512_v54 = vld [vmem:[#allocation7 + $0xf08] sm:$0xff]   ;;  %v7514_v55 = vld [vmem:[#allocation7 + $0xf50] sm:$0xff]  }
 0x107   :  { %6791 = vmatprep.subr.bf16.mxu1 %v7469_v56  ;;  %v7513_v56 = vld [vmem:[#allocation7 + $0xf88] sm:$0xff]  }
 0x109   :  { %6770 = vmatpush3.bf16.msra.mxu0 %v7470_v57  ;;  %v7515_v57 = vld [vmem:[#allocation7 + $0xfd0] sm:$0xff]  }
 0x10a   :  { %6799 = vmatprep.subr.bf16.mxu0 %v7473_v62  ;;  %6792 = vmatpush3.bf16.msra.mxu1 %v7471_v59  ;;  %v7518_v59 = vld [vmem:[#allocation7 + $0xf58] sm:$0xff]  }
 0x10b   :  { %6821 = vmatprep.subr.bf16.mxu1 %v7474_v1  ;;  %v7520_v62 = vld [vmem:[#allocation7 + $0xf18] sm:$0xff]   ;;  %v7523_v1 = vld [vmem:[#allocation7 + $0xfe0] sm:$0xff]  }
 0x10c   :  { %3564 = vmatmul.mubr.bf16.vlgmr.msra.gmra.mrb[20].mxu0 %v498_v2  ;;  %v7524_v2 = vld [vmem:[#allocation7 + $0xf20] sm:$0xff]  }
 0x10d   :  { %6800 = vmatpush3.bf16.msra.mxu0 %v7475_v3  ;;  %3604 = vmatmul.mubr.bf16.vlgmr.msra.gmra.mrb[20].mxu1 %v500_v7  ;;  %v7526_v3 = vld [vmem:[#allocation7 + $0xf68] sm:$0xff]  }
 0x10e   :  { %6801 = vmatprep.subr.bf16.mxu0 %v7477_v8  ;;  %6822 = vmatpush3.bf16.msra.mxu1 %v7476_v6  ;;  %v7528_v7 = vld [vmem:[#allocation7 + $0xf28] sm:$0xff]  }
 0x10f   :  { %6823 = vmatprep.subr.bf16.mxu1 %v7478_v10  ;;  %3643 = vmatprep.mubr.bf16.mxu0 %v503_v46  ;;  %v7546_v46 = vld [vmem:[#allocation7 + $0x1010] sm:$0xff]  }
 0x110   :  { %3683 = vmatprep.mubr.bf16.mxu1 %v505_v51  ;;  %v7551_v51 = vld [vmem:[#allocation7 + $0x60] sm:$0xff]  }
 0x111   :  { %6802 = vmatpush3.bf16.msra.mxu0 %v7479_v11 }
 0x112   :  { %6803 = vmatprep.subr.bf16.mxu0 %v7481_v13  ;;  %6824 = vmatpush3.bf16.msra.mxu1 %v7480_v12  ;;  %v7529_v13 = vld [vmem:[#allocation7 + $0xfa8] sm:$0xff]  }
 0x113   :  { %6825 = vmatprep.subr.bf16.mxu1 %v7482_v14  ;;  %v7531_v14 = vld [vmem:[#allocation7 + $0xff0] sm:$0xff]  }
 0x115   :  { %6804 = vmatpush3.bf16.msra.mxu0 %v7483_v15 }
 0x116   :  { %6805 = vmatprep.subr.bf16.mxu0 %v7485_v17  ;;  %6826 = vmatpush3.bf16.msra.mxu1 %v7484_v16 }
 0x117   :  { %6827 = vmatprep.subr.bf16.mxu1 %v7486_v18  ;;  %v7532_v18 = vld [vmem:[#allocation7 + $0xf30] sm:$0xff]  }
 0x119   :  { %6806 = vmatpush3.bf16.msra.mxu0 %v7487_v19 }
 0x11a   :  { %6807 = vmatprep.subr.bf16.mxu0 %v7489_v21  ;;  %6828 = vmatpush3.bf16.msra.mxu1 %v7488_v20  ;;  %v7534_v20 = vld [vmem:[#allocation7 + $0xf78] sm:$0xff]  }
 0x11b   :  { %6829 = vmatprep.subr.bf16.mxu1 %v7490_v22 }
 0x11d   :  { %6808 = vmatpush3.bf16.msra.mxu0 %v7491_v23  ;;  %v7533_v23 = vld [vmem:[#allocation7 + $0xfb0] sm:$0xff]  }
 0x11e   :  { %6809 = vmatprep.subr.bf16.mxu0 %v7493_v25  ;;  %6830 = vmatpush3.bf16.msra.mxu1 %v7492_v24  ;;  %v7535_v24 = vld [vmem:[#allocation7 + $0xff8] sm:$0xff]  }
 0x11f   :  { %6831 = vmatprep.subr.bf16.mxu1 %v7494_v26  ;;  %v291_v25 = vld [vmem:[#allocation5 + $0x38] sm:$0xff] }
 0x120   :  { %v7536_v26 = vld [vmem:[#allocation7 + $0xf38] sm:$0xff]  }
 0x121   :  { %6810 = vmatpush3.bf16.msra.mxu0 %v7495_v27  ;;  %v428_v27 = vrot.slane %v291_v25, %v8011_v35 }
 0x122   :  { %6811 = vmatprep.subr.bf16.mxu0 %v7497_v29  ;;  %6832 = vmatpush3.bf16.msra.mxu1 %v7496_v28  ;;  %v421_v28 = vcombine.high %v291_v25, %v291_v25  ;;  %v7537_v29 = vld [vmem:[#allocation7 + $0xfb8] sm:$0xff]   ;;  %v7566_v25 = vld [vmem:[#allocation7 + $0x88] sm:$0xff]  }
 0x123   :  { %6833 = vmatprep.subr.bf16.mxu1 %v7498_v30  ;;  %v436_v30 = vcombine.high %v428_v27, %v428_v27 }
 0x125   :  { %6812 = vmatpush3.bf16.msra.mxu0 %v7499_v31  ;;  %v435_v31 = vrot.slane %v421_v28, %v8011_v35  ;;  %v7568_v28 = vld [vmem:[#allocation7 + $0xd0] sm:$0xff]  }
 0x126   :  { %6813 = vmatprep.subr.bf16.mxu0 %v7501_v33  ;;  %6834 = vmatpush3.bf16.msra.mxu1 %v7500_v32  ;;  %v506_v32 = vpack.c.bf16 %v428_v27, %v428_v27  ;;  %v7539_v33 = vld [vmem:[#allocation7 + $0x40] sm:$0xff]  }
 0x127   :  { %6835 = vmatprep.subr.bf16.mxu1 %v7502_v34  ;;  %v507_v34 = vpack.c.bf16 %v436_v30, %v436_v30  ;;  %v508_v39 = vpack.c.bf16 %v435_v31, %v435_v31  ;;  %v7570_v30 = vld [vmem:[#allocation7 + $0x90] sm:$0xff]  }
 0x129   :  { %6814 = vmatpush3.bf16.msra.mxu0 %v7503_v36  ;;  %v437_v36 = vcombine.high %v435_v31, %v435_v31  ;;  %v7571_v31 = vld [vmem:[#allocation7 + $0x108] sm:$0xff]  }
 0x12a   :  { %6843 = vmatprep.subr.bf16.mxu0 %v7506_v40  ;;  %6836 = vmatpush3.bf16.msra.mxu1 %v7504_v41  ;;  %v7541_v41 = vld [vmem:[#allocation7] sm:$0xff]  }
 0x12b   :  { %6865 = vmatprep.subr.bf16.mxu1 %v7507_v44  ;;  %v509_v40 = vpack.c.bf16 %v437_v36, %v437_v36  ;;  %v7544_v44 = vld [vmem:[#allocation7 + $0x8] sm:$0xff]   ;;  %v7575_v36 = vld [vmem:[#allocation7 + $0x110] sm:$0xff]  }
 0x12c   :  { %3644 = vmatmul.mubr.bf16.vlgmr.msra.gmra.mrb[24].mxu0 %v502_v45  ;;  %v7545_v45 = vld [vmem:[#allocation7 + $0x50] sm:$0xff]  }
 0x12d   :  { %6844 = vmatpush3.bf16.msra.mxu0 %v7508_v48  ;;  %3684 = vmatmul.mubr.bf16.vlgmr.msra.gmra.mrb[24].mxu1 %v504_v49  ;;  %v7548_v48 = vld [vmem:[#allocation7 + $0x58] sm:$0xff]  }
 0x12e   :  { %6845 = vmatprep.subr.bf16.mxu0 %v7510_v50  ;;  %6866 = vmatpush3.bf16.msra.mxu1 %v7509_v52  ;;  %v7549_v49 = vld [vmem:[#allocation7 + $0x1018] sm:$0xff]   ;;  %v7552_v52 = vld [vmem:[#allocation7 + $0x1020] sm:$0xff]  }
 0x12f   :  { %6867 = vmatprep.subr.bf16.mxu1 %v7511_v53  ;;  %3723 = vmatprep.mubr.bf16.mxu0 %v507_v34  ;;  %v7550_v50 = vld [vmem:[#allocation7 + $0x18] sm:$0xff]   ;;  %v7553_v53 = vld [vmem:[#allocation7 + $0x20] sm:$0xff]  }
 0x130   :  { %3763 = vmatprep.mubr.bf16.mxu1 %v509_v40  ;;  %v7574_v34 = vld [vmem:[#allocation7 + $0x98] sm:$0xff]  }
 0x131   :  { %6846 = vmatpush3.bf16.msra.mxu0 %v7512_v54  ;;  %v7554_v54 = vld [vmem:[#allocation7 + $0x68] sm:$0xff]   ;;  %v7579_v40 = vld [vmem:[#allocation7 + $0x118] sm:$0xff]  }
 0x132   :  { %6847 = vmatprep.subr.bf16.mxu0 %v7514_v55  ;;  %6868 = vmatpush3.bf16.msra.mxu1 %v7513_v56  ;;  %v7558_v55 = vld [vmem:[#allocation7 + $0x1030] ss:$0 sps:$4 sm:$0xff]  }
 0x133   :  { %6869 = vmatprep.subr.bf16.mxu1 %v7515_v57  ;;  %v7555_v57 = vld [vmem:[#allocation7 + $0x1028] sm:$0xff]  }
 0x135   :  { %6848 = vmatpush3.bf16.msra.mxu0 %v7516_v58 }
 0x136   :  { %6849 = vmatprep.subr.bf16.mxu0 %v7518_v59  ;;  %6870 = vmatpush3.bf16.msra.mxu1 %v7517_v60  ;;  %v68_v59 = vld [vmem:[#allocation2] sm:$0xff] }
 0x137   :  { %6871 = vmatprep.subr.bf16.mxu1 %v7519_v61 }
 0x139   :  { %6850 = vmatpush3.bf16.msra.mxu0 %v7520_v62 }
 0x13a   :  { %6851 = vmatprep.subr.bf16.mxu0 %v7522_v63  ;;  %6872 = vmatpush3.bf16.msra.mxu1 %v7521_v0  ;;  %v7556_v63 = vld [vmem:[#allocation7 + $0x28] sm:$0xff]   ;;  %v7557_v0 = vld [vmem:[#allocation7 + $0x70] sm:$0xff]  }
 0x13b   :  { %6873 = vmatprep.subr.bf16.mxu1 %v7523_v1  ;;  %v6013_v1 = vld.sshfl [vmem:[#allocation5 + $0x40] sm:$0x3 pattern:$0x76325410] }
 0x13d   :  { %6852 = vmatpush3.bf16.msra.mxu0 %v7524_v2  ;;  %v91_v2 = vrot.slane %v68_v59, %v8011_v35 }
 0x13e   :  { %6853 = vmatprep.subr.bf16.mxu0 %v7526_v3  ;;  %6874 = vmatpush3.bf16.msra.mxu1 %v7525_v4  ;;  %v84_v3 = vcombine.high %v68_v59, %v68_v59 }
 0x13f   :  { %v6551_v6 = vpop.f32.mrb[0].mxu0  ;;  %6875 = vmatprep.subr.bf16.mxu1 %v7527_v5  ;;  %v252_v27 = vpack.c.bf16 %v91_v2, %v91_v2 }
 0x140   :  { %v6552_v8 = vpop.f32.mrb[1].mxu0  ;;  %v6573_v10 = vpop.f32.mrb[0].mxu1 }
 0x141   :  { %v6553_v11 = vadd.f32 %v6552_v8, %v6551_v6  ;;  %v6554_v12 = vpop.f32.mrb[2].mxu0  ;;  %v6574_v15 = vpop.f32.mrb[1].mxu1  ;;  %6854 = vmatpush3.bf16.msra.mxu0 %v7528_v7  ;;  %v3129_v8 = vsel %vm3127_vm1, %v7558_v55, 0  ;;  %v7589_v55 = vld [vmem:[#allocation7 + $0x170] sm:$0xff]  }
 0x142   :  { %v6555_v16 = vpop.f32.mrb[3].mxu0  ;;  %v6575_v17 = vadd.f32 %v6574_v15, %v6573_v10  ;;  %v6576_v19 = vpop.f32.mrb[2].mxu1  ;;  %6855 = vmatprep.subr.bf16.mxu0 %v7530_v9  ;;  %6876 = vmatpush3.bf16.msra.mxu1 %v7529_v13  ;;  %v99_v9 = vcombine.high %v91_v2, %v91_v2  ;;  %v8043_v13 = vrot.slane %v84_v3, %v8011_v35  ;;  %v7559_v15 = vld [vmem:[#allocation7 + $0x30] sm:$0xff]  }
 0x143   :  { %v6577_v21 = vpop.f32.mrb[3].mxu1  ;;  %6877 = vmatprep.subr.bf16.mxu1 %v7531_v14 }
 0x144   :  { %v8027_v22 = vadd.f32 %v6575_v17, %v6553_v11  ;;  %v7561_v11 = vld [vmem:[#allocation7 + $0xc0] sm:$0xff]   ;;  %v253_v16 = vpack.c.bf16 %v99_v9, %v99_v9  ;;  %v510_v17 = vpack.c.bf16 %v6013_v1, %v6013_v1  ;;  %v100_v19 = vcombine.high %v8043_v13, %v8043_v13 }
 0x145   :  { %6856 = vmatpush3.bf16.msra.mxu0 %v7532_v18  ;;  %v7560_v18 = vld [vmem:[#allocation7 + $0x78] sm:$0xff]   ;;  %v7563_v21 = vld [vmem:[#allocation7 + $0x80] sm:$0xff]  }
 0x146   :  { %6857 = vmatprep.subr.bf16.mxu0 %v7534_v20  ;;  %6878 = vmatpush3.bf16.msra.mxu1 %v7533_v23  ;;  %v7562_v20 = vld [vmem:[#allocation7 + $0x38] sm:$0xff]   ;;  %v255_v23 = vpack.c.bf16 %v100_v19, %v100_v19  ;;  %v7594_v1 = vld [vmem:[#allocation7 + $0x1c0] sm:$0xff]   ;;  %v7601_v19 = vld [vmem:[#allocation7 + $0x1d0] sm:$0xff]  }
 0x147   :  { %6879 = vmatprep.subr.bf16.mxu1 %v7535_v24  ;;  %v7565_v24 = vld [vmem:[#allocation7 + $0x140] sm:$0xff]  }
 0x149   :  { %6858 = vmatpush3.bf16.msra.mxu0 %v7536_v26  ;;  %v7567_v26 = vld [vmem:[#allocation7 + $0x100] sm:$0xff]  }
 0x14a   :  { %7247 = vmatprep.subr.bf16.mxu0 %v7935_v38  ;;  %6880 = vmatpush3.bf16.msra.mxu1 %v7537_v29  ;;  %v7569_v29 = vld [vmem:[#allocation7 + $0x148] sm:$0xff]  }
 0x14b   :  { %6895 = vmatprep.subr.bf16.mxu1 %v7539_v33  ;;  %v7573_v33 = vld [vmem:[#allocation7 + $0x150] sm:$0xff]  }
 0x14c   :  { %3724 = vmatmul.mubr.bf16.vlgmr.msra.gmra.mrb[28].mxu0 %v506_v32  ;;  %v7572_v32 = vld [vmem:[#allocation7 + $0xd8] sm:$0xff]  }
 0x14d   :  { %7248 = vmatpush3.bf16.msra.mxu0 %v7540_v37  ;;  %3764 = vmatmul.mubr.bf16.vlgmr.msra.gmra.mrb[28].mxu1 %v508_v39  ;;  %v7576_v37 = vld [vmem:[#allocation7 + $0xe0] sm:$0xff]  }
 0x14e   :  { %7249 = vmatprep.subr.bf16.mxu0 %v7935_v38  ;;  %6896 = vmatpush3.bf16.msra.mxu1 %v7541_v41  ;;  %v7578_v39 = vld [vmem:[#allocation7 + $0xa0] sm:$0xff]   ;;  %v7580_v41 = vld [vmem:[#allocation7 + $0xe8] sm:$0xff]  }
 0x14f   :  { %7261 = vmatprep.mubr.msk.bf16.mxu0 %vm7936_vm0, %v7935_v38  ;;  %6897 = vmatprep.subr.bf16.mxu1 %v7542_v42  ;;  %v7581_v42 = vld [vmem:[#allocation7 + $0x160] sm:$0xff]  }
 0x150   :  { %5379 = vmatprep.mubr.bf16.mxu1 %v253_v16  ;;  %v7598_v16 = vld [vmem:[#allocation7 + $0x240] sm:$0xff]  }
 0x151   :  { %7250 = vmatpush3.bf16.msra.mxu0 %v7543_v43  ;;  %v7582_v43 = vld [vmem:[#allocation7 + $0xa8] sm:$0xff]  }
 0x152   :  { %7251 = vmatprep.subr.bf16.mxu0 %v7935_v38  ;;  %6898 = vmatpush3.bf16.msra.mxu1 %v7544_v44  ;;  %v7583_v44 = vld [vmem:[#allocation7 + $0x120] sm:$0xff]  }
 0x153   :  { %6899 = vmatprep.subr.bf16.mxu1 %v7545_v45  ;;  %v7584_v45 = vld [vmem:[#allocation7 + $0xf0] sm:$0xff]  }
 0x155   :  { %7252 = vmatpush3.bf16.msra.mxu0 %v7546_v46  ;;  %v7585_v46 = vld [vmem:[#allocation7 + $0x168] sm:$0xff]  }
 0x156   :  { %7253 = vmatprep.subr.bf16.mxu0 %v7935_v38  ;;  %6900 = vmatpush3.bf16.msra.mxu1 %v7547_v47  ;;  %v7586_v47 = vld [vmem:[#allocation7 + $0xb0] sm:$0xff]  }
 0x157   :  { %6901 = vmatprep.subr.bf16.mxu1 %v7548_v48 }
 0x159   :  { %7254 = vmatpush3.bf16.msra.mxu0 %v7549_v49  ;;  %v7587_v49 = vld [vmem:[#allocation7 + $0x128] sm:$0xff]  }
 0x15a   :  { %7255 = vmatprep.subr.bf16.mxu0 %v7935_v38  ;;  %6902 = vmatpush3.bf16.msra.mxu1 %v7550_v50 }
 0x15b   :  { %6903 = vmatprep.subr.bf16.mxu1 %v7551_v51  ;;  %v7588_v51 = vld [vmem:[#allocation7 + $0xf8] sm:$0xff]  }
 0x15d   :  { %7256 = vmatpush3.bf16.msra.mxu0 %v7552_v52 }
 0x15e   :  { %7257 = vmatprep.subr.bf16.mxu0 %v7935_v38  ;;  %6904 = vmatpush3.bf16.msra.mxu1 %v7553_v53 }
 0x15f   :  { %v6595_v56 = vpop.f32.mrb[4].mxu0  ;;  %6905 = vmatprep.subr.bf16.mxu1 %v7554_v54 }
 0x160   :  { %v6596_v58 = vpop.f32.mrb[5].mxu0  ;;  %v6617_v62 = vpop.f32.mrb[4].mxu1 }
 0x161   :  { %v6597_v60 = vadd.f32 %v6596_v58, %v6595_v56  ;;  %v6598_v61 = vpop.f32.mrb[6].mxu0  ;;  %v6618_v5 = vpop.f32.mrb[5].mxu1  ;;  %7258 = vmatpush3.bf16.msra.mxu0 %v7555_v57  ;;  %v69_v56 = vld [vmem:[#allocation2 + $0x8] sm:$0xff] }
 0x162   :  { %v6599_v4 = vpop.f32.mrb[7].mxu0  ;;  %v6619_v7 = vadd.f32 %v6618_v5, %v6617_v62  ;;  %v6620_v10 = vpop.f32.mrb[6].mxu1  ;;  %7259 = vmatprep.subr.bf16.mxu0 %v7935_v38  ;;  %6906 = vmatpush3.bf16.msra.mxu1 %v7556_v63  ;;  %v7577_v38 = vld [vmem:[#allocation7 + $0x158] sm:$0xff]   ;;  %v108_v59 = vrot.slane %v69_v56, %v8011_v35 }
 0x163   :  { %v3246_v6 = vadd.f32 %v6597_v60, %v8027_v22  ;;  %v6621_v12 = vpop.f32.mrb[7].mxu1  ;;  %6907 = vmatprep.subr.bf16.mxu1 %v7557_v0  ;;  %v7564_v22 = vld [vmem:[#allocation7 + $0xc8] sm:$0xff]   ;;  %v101_v60 = vcombine.high %v69_v56, %v69_v56  ;;  %v7590_v63 = vld [vmem:[#allocation7 + $0xb8] sm:$0xff]  }
 0x164   :  { %v116_v2 = vcombine.high %v108_v59, %v108_v59  ;;  %v7596_v12 = vld [vmem:[#allocation7 + $0x180] sm:$0xff]  }
 0x165   :  { %v8045_v14 = vadd.f32 %v6619_v7, %v3246_v6  ;;  %7260 = vmatpush3.bf16.msra.mxu0 %v3129_v8  ;;  %v8052_v4 = vrot.slane %v101_v60, %v8011_v35  ;;  %v7591_v6 = vld [vmem:[#allocation7 + $0x130] sm:$0xff]   ;;  %v254_v7 = vpack.c.bf16 %v8043_v13, %v8043_v13  ;;  %v7593_v8 = vld [vmem:[#allocation7 + $0x178] sm:$0xff]   ;;  %v256_v13 = vpack.c.bf16 %v108_v59, %v108_v59 }
 0x166   :  { %6917 = vmatprep.subr.bf16.mxu0 %v7561_v11  ;;  %6908 = vmatpush3.bf16.msra.mxu1 %v7559_v15  ;;  %v257_v9 = vpack.c.bf16 %v116_v2, %v116_v2  ;;  %v7595_v11 = vld [vmem:[#allocation7 + $0x138] sm:$0xff]  }
 0x167   :  { %6909 = vmatprep.subr.bf16.mxu1 %v7560_v18  ;;  %v117_v10 = vcombine.high %v8052_v4, %v8052_v4  ;;  %v7600_v18 = vld [vmem:[#allocation7 + $0x200] sm:$0xff]  }
 0x168   :  { %7262 = vmatmul.mubr.msk.bf16.vlgmr.msra.gmra.mrb[32].mxu0 %vm3123_vm2, %v510_v17  ;;  %v7599_v17 = vld [vmem:[#allocation7 + $0x188] sm:$0xff]  }
 0x169   :  { %6918 = vmatpush3.bf16.msra.mxu0 %v7563_v21  ;;  %5419 = vmatprep.mubr.bf16.mxu0 %v255_v23  ;;  %v259_v15 = vpack.c.bf16 %v117_v10, %v117_v10  ;;  %v7603_v21 = vld [vmem:[#allocation7 + $0x190] sm:$0xff]   ;;  %v7605_v23 = vld [vmem:[#allocation7 + $0x1d8] sm:$0xff]   ;;  %v7633_v10 = vld [vmem:[#allocation7 + $0x300] sm:$0xff]  }
 0x16a   :  { %6919 = vmatprep.subr.bf16.mxu0 %v7564_v22  ;;  %6910 = vmatpush3.bf16.msra.mxu1 %v7562_v20  ;;  %v7602_v20 = vld [vmem:[#allocation7 + $0x248] sm:$0xff]  }
 0x16b   :  { %6939 = vmatprep.subr.bf16.mxu1 %v7565_v24  ;;  %v7604_v22 = vld [vmem:[#allocation7 + $0x208] sm:$0xff]   ;;  %v7606_v24 = vld [vmem:[#allocation7 + $0x250] sm:$0xff]  }
 0x16d   :  { %6920 = vmatpush3.bf16.msra.mxu0 %v7566_v25  ;;  %5380 = vmatmul.mubr.bf16.vlgmr.msra.gmra.mrb[32].mxu1 %v252_v27  ;;  %v7607_v25 = vld [vmem:[#allocation7 + $0x198] sm:$0xff]   ;;  %v7609_v27 = vld [vmem:[#allocation7 + $0x1e0] sm:$0xff]  }
 0x16e   :  { %6921 = vmatprep.subr.bf16.mxu0 %v7568_v28  ;;  %6940 = vmatpush3.bf16.msra.mxu1 %v7567_v26  ;;  %v7608_v26 = vld [vmem:[#allocation7 + $0x210] sm:$0xff]   ;;  %v7610_v28 = vld [vmem:[#allocation7 + $0x258] sm:$0xff]  }
 0x16f   :  { %6941 = vmatprep.subr.bf16.mxu1 %v7569_v29  ;;  %5459 = vmatprep.mubr.bf16.mxu1 %v257_v9  ;;  %v7611_v29 = vld [vmem:[#allocation7 + $0x1a0] sm:$0xff]   ;;  %v7634_v9 = vld [vmem:[#allocation7 + $0x2d0] sm:$0xff]  }
 0x171   :  { %6922 = vmatpush3.bf16.msra.mxu0 %v7570_v30  ;;  %v7612_v30 = vld [vmem:[#allocation7 + $0x218] sm:$0xff]  }
 0x172   :  { %6923 = vmatprep.subr.bf16.mxu0 %v7572_v32  ;;  %6942 = vmatpush3.bf16.msra.mxu1 %v7571_v31  ;;  %v7613_v31 = vld [vmem:[#allocation7 + $0x1e8] sm:$0xff]   ;;  %v7614_v32 = vld [vmem:[#allocation7 + $0x260] sm:$0xff]  }
 0x173   :  { %6943 = vmatprep.subr.bf16.mxu1 %v7573_v33  ;;  %v7615_v33 = vld [vmem:[#allocation7 + $0x1a8] sm:$0xff]  }
 0x175   :  { %6924 = vmatpush3.bf16.msra.mxu0 %v7574_v34  ;;  %v7616_v34 = vld [vmem:[#allocation7 + $0x220] sm:$0xff]  }
 0x176   :  { %6925 = vmatprep.subr.bf16.mxu0 %v7576_v37  ;;  %6944 = vmatpush3.bf16.msra.mxu1 %v7575_v36  ;;  %v7617_v36 = vld [vmem:[#allocation7 + $0x1f0] sm:$0xff]   ;;  %v7618_v37 = vld [vmem:[#allocation7 + $0x268] sm:$0xff]  }
 0x177   :  { %6945 = vmatprep.subr.bf16.mxu1 %v7577_v38  ;;  %v7619_v38 = vld [vmem:[#allocation7 + $0x1b0] sm:$0xff]  }
 0x179   :  { %6926 = vmatpush3.bf16.msra.mxu0 %v7578_v39  ;;  %v7620_v39 = vld [vmem:[#allocation7 + $0x228] sm:$0xff]  }
 0x17a   :  { %6927 = vmatprep.subr.bf16.mxu0 %v7580_v41  ;;  %6946 = vmatpush3.bf16.msra.mxu1 %v7579_v40  ;;  %v7621_v41 = vld [vmem:[#allocation7 + $0x1f8] sm:$0xff]  }
 0x17b   :  { %6947 = vmatprep.subr.bf16.mxu1 %v7581_v42 }
 0x17d   :  { %6928 = vmatpush3.bf16.msra.mxu0 %v7582_v43  ;;  %v7622_v43 = vld [vmem:[#allocation7 + $0x270] sm:$0xff]  }
 0x17e   :  { %6929 = vmatprep.subr.bf16.mxu0 %v7584_v45  ;;  %6948 = vmatpush3.bf16.msra.mxu1 %v7583_v44  ;;  %v70_v44 = vld [vmem:[#allocation2 + $0x10] sm:$0xff] }
 0x17f   :  { %v6639_v48 = vpop.f32.mrb[8].mxu0  ;;  %6949 = vmatprep.subr.bf16.mxu1 %v7585_v46 }
 0x180   :  { %v6640_v50 = vpop.f32.mrb[9].mxu0  ;;  %v6661_v54 = vpop.f32.mrb[8].mxu1 }
 0x181   :  { %v6641_v52 = vadd.f32 %v6640_v50, %v6639_v48  ;;  %v6642_v53 = vpop.f32.mrb[10].mxu0  ;;  %v6662_v58 = vpop.f32.mrb[9].mxu1  ;;  %6930 = vmatpush3.bf16.msra.mxu0 %v7586_v47  ;;  %v125_v48 = vrot.slane %v70_v44, %v8011_v35 }
 0x182   :  { %v6643_v57 = vpop.f32.mrb[11].mxu0  ;;  %v6663_v62 = vadd.f32 %v6662_v58, %v6661_v54  ;;  %v6664_v0 = vpop.f32.mrb[10].mxu1  ;;  %6931 = vmatprep.subr.bf16.mxu0 %v7588_v51  ;;  %6950 = vmatpush3.bf16.msra.mxu1 %v7587_v49  ;;  %v118_v49 = vcombine.high %v70_v44, %v70_v44  ;;  %v7627_v53 = vld [vmem:[#allocation7 + $0x2c0] sm:$0xff]  }
 0x183   :  { %v3326_v61 = vadd.f32 %v6641_v52, %v8045_v14  ;;  %v6665_v3 = vpop.f32.mrb[11].mxu1  ;;  %6951 = vmatprep.subr.bf16.mxu1 %v7589_v55  ;;  %v7597_v14 = vld [vmem:[#allocation7 + $0x1c8] sm:$0xff]   ;;  %v7623_v52 = vld [vmem:[#allocation7 + $0x1b8] sm:$0xff]   ;;  %v133_v56 = vcombine.high %v125_v48, %v125_v48  ;;  %v7624_v57 = vld [vmem:[#allocation7 + $0x230] sm:$0xff]  }
 0x184   :  { %v8063_v59 = vrot.slane %v118_v49, %v8011_v35  ;;  %v7630_v3 = vld [vmem:[#allocation7 + $0x2c8] sm:$0xff]  }
 0x185   :  { %v8054_v5 = vadd.f32 %v6663_v62, %v3326_v61  ;;  %6932 = vmatpush3.bf16.msra.mxu0 %v7590_v63  ;;  %v258_v61 = vpack.c.bf16 %v8052_v4, %v8052_v4  ;;  %v7626_v62 = vld [vmem:[#allocation7 + $0x278] sm:$0xff]   ;;  %v261_v63 = vpack.c.bf16 %v133_v56, %v133_v56  ;;  %v260_v4 = vpack.c.bf16 %v125_v48, %v125_v48  ;;  %v7662_v56 = vld [vmem:[#allocation7 + $0x380] sm:$0xff]  }
 0x186   :  { %6961 = vmatprep.subr.bf16.mxu0 %v7594_v1  ;;  %6952 = vmatpush3.bf16.msra.mxu1 %v7591_v6  ;;  %v7629_v1 = vld [vmem:[#allocation7 + $0x280] sm:$0xff]   ;;  %v134_v2 = vcombine.high %v8063_v59, %v8063_v59 }
 0x187   :  { %6953 = vmatprep.subr.bf16.mxu1 %v7593_v8  ;;  %v7632_v8 = vld [vmem:[#allocation7 + $0x288] sm:$0xff]  }
 0x188   :  { %5420 = vmatmul.mubr.bf16.vlgmr.msra.gmra.mrb[36].mxu0 %v254_v7  ;;  %v263_v6 = vpack.c.bf16 %v134_v2, %v134_v2  ;;  %v7631_v7 = vld [vmem:[#allocation7 + $0x340] sm:$0xff]   ;;  %v7668_v2 = vld [vmem:[#allocation7 + $0x448] sm:$0xff]  }
 0x189   :  { %6962 = vmatpush3.bf16.msra.mxu0 %v7596_v12  ;;  %5499 = vmatprep.mubr.bf16.mxu0 %v259_v15  ;;  %v7636_v12 = vld [vmem:[#allocation7 + $0x290] sm:$0xff]   ;;  %v7637_v15 = vld [vmem:[#allocation7 + $0x308] sm:$0xff]  }
 0x18a   :  { %6963 = vmatprep.subr.bf16.mxu0 %v7597_v14  ;;  %6954 = vmatpush3.bf16.msra.mxu1 %v7595_v11  ;;  %v7635_v11 = vld [vmem:[#allocation7 + $0x348] sm:$0xff]   ;;  %v7638_v14 = vld [vmem:[#allocation7 + $0x2d8] sm:$0xff]  }
 0x18b   :  { %6983 = vmatprep.subr.bf16.mxu1 %v7598_v16  ;;  %v7639_v16 = vld [vmem:[#allocation7 + $0x350] sm:$0xff]  }
 0x18d   :  { %6964 = vmatpush3.bf16.msra.mxu0 %v7599_v17  ;;  %5460 = vmatmul.mubr.bf16.vlgmr.msra.gmra.mrb[36].mxu1 %v256_v13  ;;  %v7640_v17 = vld [vmem:[#allocation7 + $0x298] sm:$0xff]   ;;  %v7641_v13 = vld [vmem:[#allocation7 + $0x310] sm:$0xff]  }
 0x18e   :  { %6965 = vmatprep.subr.bf16.mxu0 %v7601_v19  ;;  %6984 = vmatpush3.bf16.msra.mxu1 %v7600_v18  ;;  %v7642_v18 = vld [vmem:[#allocation7 + $0x2e0] sm:$0xff]   ;;  %v7643_v19 = vld [vmem:[#allocation7 + $0x358] sm:$0xff]  }
 0x18f   :  { %6985 = vmatprep.subr.bf16.mxu1 %v7602_v20  ;;  %5539 = vmatprep.mubr.bf16.mxu1 %v261_v63  ;;  %v7644_v20 = vld [vmem:[#allocation7 + $0x2a0] sm:$0xff]   ;;  %v7665_v63 = vld [vmem:[#allocation7 + $0x388] sm:$0xff]  }
 0x191   :  { %6966 = vmatpush3.bf16.msra.mxu0 %v7603_v21  ;;  %v7646_v21 = vld [vmem:[#allocation7 + $0x2e8] sm:$0xff]  }
 0x192   :  { %6967 = vmatprep.subr.bf16.mxu0 %v7605_v23  ;;  %6986 = vmatpush3.bf16.msra.mxu1 %v7604_v22  ;;  %v7645_v22 = vld [vmem:[#allocation7 + $0x318] sm:$0xff]   ;;  %v7647_v23 = vld [vmem:[#allocation7 + $0x360] sm:$0xff]  }
 0x193   :  { %6987 = vmatprep.subr.bf16.mxu1 %v7606_v24  ;;  %v7648_v24 = vld [vmem:[#allocation7 + $0x2a8] sm:$0xff]  }
 0x195   :  { %6968 = vmatpush3.bf16.msra.mxu0 %v7607_v25  ;;  %v7650_v25 = vld [vmem:[#allocation7 + $0x2f0] sm:$0xff]  }
 0x196   :  { %6969 = vmatprep.subr.bf16.mxu0 %v7609_v27  ;;  %6988 = vmatpush3.bf16.msra.mxu1 %v7608_v26  ;;  %v7649_v26 = vld [vmem:[#allocation7 + $0x320] sm:$0xff]   ;;  %v7651_v27 = vld [vmem:[#allocation7 + $0x368] sm:$0xff]  }
 0x197   :  { %6989 = vmatprep.subr.bf16.mxu1 %v7610_v28  ;;  %v7652_v28 = vld [vmem:[#allocation7 + $0x2b0] sm:$0xff]  }
 0x199   :  { %6970 = vmatpush3.bf16.msra.mxu0 %v7611_v29 }
 0x19a   :  { %6971 = vmatprep.subr.bf16.mxu0 %v7613_v31  ;;  %6990 = vmatpush3.bf16.msra.mxu1 %v7612_v30  ;;  %v7654_v30 = vld [vmem:[#allocation7 + $0x2f8] sm:$0xff]  }
 0x19b   :  { %6991 = vmatprep.subr.bf16.mxu1 %v7614_v32  ;;  %v7653_v32 = vld [vmem:[#allocation7 + $0x328] sm:$0xff]  }
 0x19d   :  { %6972 = vmatpush3.bf16.msra.mxu0 %v7615_v33 }
 0x19e   :  { %6973 = vmatprep.subr.bf16.mxu0 %v7617_v36  ;;  %6992 = vmatpush3.bf16.msra.mxu1 %v7616_v34 }
 0x19f   :  { %v6683_v40 = vpop.f32.mrb[12].mxu0  ;;  %6993 = vmatprep.subr.bf16.mxu1 %v7618_v37  ;;  %v7655_v37 = vld [vmem:[#allocation7 + $0x370] sm:$0xff]  }
 0x1a0   :  { %v6684_v42 = vpop.f32.mrb[13].mxu0  ;;  %v6705_v47 = vpop.f32.mrb[12].mxu1 }
 0x1a1   :  { %v6685_v45 = vadd.f32 %v6684_v42, %v6683_v40  ;;  %v6686_v46 = vpop.f32.mrb[14].mxu0  ;;  %6974 = vmatpush3.bf16.msra.mxu0 %v7619_v38  ;;  %v6706_v51 = vpop.f32.mrb[13].mxu1  ;;  %v71_v38 = vld [vmem:[#allocation2 + $0x18] sm:$0xff]  ;;  %v7660_v42 = vld [vmem:[#allocation7 + $0x3c0] sm:$0xff]  }
 0x1a2   :  { %v6687_v50 = vpop.f32.mrb[15].mxu0  ;;  %v6707_v55 = vadd.f32 %v6706_v51, %v6705_v47  ;;  %6975 = vmatprep.subr.bf16.mxu0 %v7621_v41  ;;  %6994 = vmatpush3.bf16.msra.mxu1 %v7620_v39  ;;  %v6708_v58 = vpop.f32.mrb[14].mxu1  ;;  %v7656_v41 = vld [vmem:[#allocation7 + $0x2b8] sm:$0xff]   ;;  %v135_v44 = vcombine.high %v71_v38, %v71_v38  ;;  %v7657_v47 = vld [vmem:[#allocation7 + $0x330] sm:$0xff]  }
 0x1a3   :  { %v3406_v54 = vadd.f32 %v6685_v45, %v8054_v5  ;;  %6995 = vmatprep.subr.bf16.mxu1 %v7622_v43  ;;  %v6709_v0 = vpop.f32.mrb[15].mxu1  ;;  %v7628_v5 = vld [vmem:[#allocation7 + $0x238] sm:$0xff]   ;;  %v142_v43 = vrot.slane %v71_v38, %v8011_v35 }
 0x1a4   :  { %v8074_v50 = vrot.slane %v135_v44, %v8011_v35 }
 0x1a5   :  { %v8065_v60 = vadd.f32 %v6707_v55, %v3406_v54  ;;  %6976 = vmatpush3.bf16.msra.mxu0 %v7623_v52  ;;  %v150_v48 = vcombine.high %v142_v43, %v142_v43  ;;  %v262_v52 = vpack.c.bf16 %v8063_v59, %v8063_v59  ;;  %v7661_v55 = vld [vmem:[#allocation7 + $0x338] sm:$0xff]   ;;  %v7666_v59 = vld [vmem:[#allocation7 + $0x400] sm:$0xff]   ;;  %v264_v0 = vpack.c.bf16 %v142_v43, %v142_v43 }
 0x1a6   :  { %7005 = vmatprep.subr.bf16.mxu0 %v7627_v53  ;;  %6996 = vmatpush3.bf16.msra.mxu1 %v7624_v57  ;;  %v7659_v53 = vld [vmem:[#allocation7 + $0x378] sm:$0xff]   ;;  %v151_v58 = vcombine.high %v8074_v50, %v8074_v50  ;;  %v266_v44 = vpack.c.bf16 %v8074_v50, %v8074_v50 }
 0x1a7   :  { %6997 = vmatprep.subr.bf16.mxu1 %v7626_v62  ;;  %v265_v57 = vpack.c.bf16 %v150_v48, %v150_v48 }
 0x1a8   :  { %5500 = vmatmul.mubr.bf16.vlgmr.msra.gmra.mrb[40].mxu0 %v258_v61  ;;  %v7664_v61 = vld [vmem:[#allocation7 + $0x440] sm:$0xff]   ;;  %v267_v62 = vpack.c.bf16 %v151_v58, %v151_v58  ;;  %v7702_v58 = vld [vmem:[#allocation7 + $0x490] sm:$0xff]  }
 0x1a9   :  { %7006 = vmatpush3.bf16.msra.mxu0 %v7629_v1  ;;  %5579 = vmatprep.mubr.bf16.mxu0 %v263_v6  ;;  %v7667_v1 = vld [vmem:[#allocation7 + $0x3d0] sm:$0xff]   ;;  %v7671_v6 = vld [vmem:[#allocation7 + $0x3d8] sm:$0xff]  }
 0x1aa   :  { %7007 = vmatprep.subr.bf16.mxu0 %v7630_v3  ;;  %6998 = vmatpush3.bf16.msra.mxu1 %v7628_v5  ;;  %v7669_v3 = vld [vmem:[#allocation7 + $0x390] sm:$0xff]   ;;  %v7670_v5 = vld [vmem:[#allocation7 + $0x408] sm:$0xff]  }
 0x1ab   :  { %7027 = vmatprep.subr.bf16.mxu1 %v7631_v7  ;;  %v7672_v7 = vld [vmem:[#allocation7 + $0x450] sm:$0xff]  }
 0x1ad   :  { %7008 = vmatpush3.bf16.msra.mxu0 %v7632_v8  ;;  %5540 = vmatmul.mubr.bf16.vlgmr.msra.gmra.mrb[40].mxu1 %v260_v4  ;;  %v7673_v8 = vld [vmem:[#allocation7 + $0x398] sm:$0xff]   ;;  %v7674_v4 = vld [vmem:[#allocation7 + $0x410] sm:$0xff]  }
 0x1ae   :  { %7009 = vmatprep.subr.bf16.mxu0 %v7634_v9  ;;  %7028 = vmatpush3.bf16.msra.mxu1 %v7633_v10  ;;  %v7675_v9 = vld [vmem:[#allocation7 + $0x3e0] sm:$0xff]   ;;  %v7676_v10 = vld [vmem:[#allocation7 + $0x458] sm:$0xff]  }
 0x1af   :  { %7029 = vmatprep.subr.bf16.mxu1 %v7635_v11  ;;  %5619 = vmatprep.mubr.bf16.mxu1 %v265_v57  ;;  %v7677_v11 = vld [vmem:[#allocation7 + $0x3a0] sm:$0xff]   ;;  %v7701_v57 = vld [vmem:[#allocation7 + $0x548] sm:$0xff]  }
 0x1b1   :  { %7010 = vmatpush3.bf16.msra.mxu0 %v7636_v12  ;;  %v7678_v12 = vld [vmem:[#allocation7 + $0x418] sm:$0xff]  }
 0x1b2   :  { %7011 = vmatprep.subr.bf16.mxu0 %v7638_v14  ;;  %7030 = vmatpush3.bf16.msra.mxu1 %v7637_v15  ;;  %v7679_v14 = vld [vmem:[#allocation7 + $0x3e8] sm:$0xff]   ;;  %v7680_v15 = vld [vmem:[#allocation7 + $0x460] sm:$0xff]  }
 0x1b3   :  { %7031 = vmatprep.subr.bf16.mxu1 %v7639_v16  ;;  %v7681_v16 = vld [vmem:[#allocation7 + $0x3a8] sm:$0xff]  }
 0x1b5   :  { %7012 = vmatpush3.bf16.msra.mxu0 %v7640_v17  ;;  %v7682_v17 = vld [vmem:[#allocation7 + $0x420] sm:$0xff]  }
 0x1b6   :  { %7013 = vmatprep.subr.bf16.mxu0 %v7642_v18  ;;  %7032 = vmatpush3.bf16.msra.mxu1 %v7641_v13  ;;  %v7683_v18 = vld [vmem:[#allocation7 + $0x3f0] sm:$0xff]   ;;  %v7684_v13 = vld [vmem:[#allocation7 + $0x468] sm:$0xff]  }
 0x1b7   :  { %7033 = vmatprep.subr.bf16.mxu1 %v7643_v19  ;;  %v7685_v19 = vld [vmem:[#allocation7 + $0x3b0] sm:$0xff]  }
 0x1b9   :  { %7014 = vmatpush3.bf16.msra.mxu0 %v7644_v20  ;;  %v7686_v20 = vld [vmem:[#allocation7 + $0x428] sm:$0xff]  }
 0x1ba   :  { %7015 = vmatprep.subr.bf16.mxu0 %v7646_v21  ;;  %7034 = vmatpush3.bf16.msra.mxu1 %v7645_v22  ;;  %v7687_v22 = vld [vmem:[#allocation7 + $0x3f8] sm:$0xff]  }
 0x1bb   :  { %7035 = vmatprep.subr.bf16.mxu1 %v7647_v23 }
 0x1bd   :  { %7016 = vmatpush3.bf16.msra.mxu0 %v7648_v24  ;;  %v7688_v24 = vld [vmem:[#allocation7 + $0x470] sm:$0xff]  }
 0x1be   :  { %7017 = vmatprep.subr.bf16.mxu0 %v7650_v25  ;;  %7036 = vmatpush3.bf16.msra.mxu1 %v7649_v26 }
 0x1bf   :  { %v6727_v29 = vpop.f32.mrb[16].mxu0  ;;  %7037 = vmatprep.subr.bf16.mxu1 %v7651_v27 }
 0x1c0   :  { %v6728_v31 = vpop.f32.mrb[17].mxu0  ;;  %v6749_v36 = vpop.f32.mrb[16].mxu1 }
 0x1c1   :  { %v6729_v33 = vadd.f32 %v6728_v31, %v6727_v29  ;;  %v6730_v34 = vpop.f32.mrb[18].mxu0  ;;  %7018 = vmatpush3.bf16.msra.mxu0 %v7652_v28  ;;  %v6750_v40 = vpop.f32.mrb[17].mxu1  ;;  %v7689_v28 = vld [vmem:[#allocation7 + $0x3b8] sm:$0xff]  }
 0x1c2   :  { %v6731_v39 = vpop.f32.mrb[19].mxu0  ;;  %v6751_v46 = vadd.f32 %v6750_v40, %v6749_v36  ;;  %7019 = vmatprep.subr.bf16.mxu0 %v7654_v30  ;;  %7038 = vmatpush3.bf16.msra.mxu1 %v7653_v32  ;;  %v6752_v49 = vpop.f32.mrb[18].mxu1  ;;  %v72_v29 = vld [vmem:[#allocation2 + $0x20] sm:$0xff] }
 0x1c3   :  { %v3486_v45 = vadd.f32 %v6729_v33, %v8065_v60  ;;  %7039 = vmatprep.subr.bf16.mxu1 %v7655_v37  ;;  %v6753_v54 = vpop.f32.mrb[19].mxu1  ;;  %v7663_v60 = vld [vmem:[#allocation7 + $0x3c8] sm:$0xff]   ;;  %v159_v32 = vrot.slane %v72_v29, %v8011_v35  ;;  %v152_v33 = vcombine.high %v72_v29, %v72_v29  ;;  %v7693_v37 = vld [vmem:[#allocation7 + $0x4c0] sm:$0xff]   ;;  %v7690_v39 = vld [vmem:[#allocation7 + $0x430] sm:$0xff]  }
 0x1c4   :  { %v7696_v49 = vld [vmem:[#allocation7 + $0x4c8] sm:$0xff]  }
 0x1c5   :  { %v8076_v51 = vadd.f32 %v6751_v46, %v3486_v45  ;;  %7020 = vmatpush3.bf16.msra.mxu0 %v7656_v41  ;;  %v167_v40 = vcombine.high %v159_v32, %v159_v32  ;;  %v7692_v45 = vld [vmem:[#allocation7 + $0x478] sm:$0xff]   ;;  %v7695_v46 = vld [vmem:[#allocation7 + $0x480] sm:$0xff]   ;;  %v7698_v54 = vld [vmem:[#allocation7 + $0x488] sm:$0xff]   ;;  %v268_v50 = vpack.c.bf16 %v159_v32, %v159_v32 }
 0x1c6   :  { %7049 = vmatprep.subr.bf16.mxu0 %v7660_v42  ;;  %7040 = vmatpush3.bf16.msra.mxu1 %v7657_v47  ;;  %v8085_v42 = vrot.slane %v152_v33, %v8011_v35 }
 0x1c7   :  { %7041 = vmatprep.subr.bf16.mxu1 %v7659_v53  ;;  %v269_v47 = vpack.c.bf16 %v167_v40, %v167_v40  ;;  %v7697_v53 = vld [vmem:[#allocation7 + $0x540] sm:$0xff]   ;;  %v7729_v40 = vld [vmem:[#allocation7 + $0x5c8] sm:$0xff]  }
 0x1c8   :  { %5580 = vmatmul.mubr.bf16.vlgmr.msra.gmra.mrb[44].mxu0 %v262_v52  ;;  %v168_v48 = vcombine.high %v8085_v42, %v8085_v42  ;;  %v270_v29 = vpack.c.bf16 %v8085_v42, %v8085_v42  ;;  %v7730_v42 = vld [vmem:[#allocation7 + $0x640] sm:$0xff]  }
 0x1c9   :  { %7050 = vmatpush3.bf16.msra.mxu0 %v7662_v56  ;;  %5659 = vmatprep.mubr.bf16.mxu0 %v267_v62  ;;  %v7699_v56 = vld [vmem:[#allocation7 + $0x500] sm:$0xff]   ;;  %v7705_v62 = vld [vmem:[#allocation7 + $0x550] sm:$0xff]  }
 0x1ca   :  { %7051 = vmatprep.subr.bf16.mxu0 %v7663_v60  ;;  %7042 = vmatpush3.bf16.msra.mxu1 %v7661_v55  ;;  %v271_v52 = vpack.c.bf16 %v168_v48, %v168_v48  ;;  %v7700_v55 = vld [vmem:[#allocation7 + $0x4d0] sm:$0xff]   ;;  %v7704_v60 = vld [vmem:[#allocation7 + $0x4d8] sm:$0xff]   ;;  %v7734_v48 = vld [vmem:[#allocation7 + $0x648] sm:$0xff]  }
 0x1cb   :  { %7071 = vmatprep.subr.bf16.mxu1 %v7664_v61  ;;  %v7703_v61 = vld [vmem:[#allocation7 + $0x508] sm:$0xff]  }
 0x1cd   :  { %7052 = vmatpush3.bf16.msra.mxu0 %v7665_v63  ;;  %5620 = vmatmul.mubr.bf16.vlgmr.msra.gmra.mrb[44].mxu1 %v264_v0  ;;  %v7706_v63 = vld [vmem:[#allocation7 + $0x498] sm:$0xff]   ;;  %v7707_v0 = vld [vmem:[#allocation7 + $0x510] sm:$0xff]  }
 0x1ce   :  { %7053 = vmatprep.subr.bf16.mxu0 %v7667_v1  ;;  %7072 = vmatpush3.bf16.msra.mxu1 %v7666_v59  ;;  %v7708_v59 = vld [vmem:[#allocation7 + $0x4e0] sm:$0xff]   ;;  %v7709_v1 = vld [vmem:[#allocation7 + $0x558] sm:$0xff]  }
 0x1cf   :  { %7073 = vmatprep.subr.bf16.mxu1 %v7668_v2  ;;  %5699 = vmatprep.mubr.bf16.mxu1 %v269_v47  ;;  %v7710_v2 = vld [vmem:[#allocation7 + $0x4a0] sm:$0xff]   ;;  %v7733_v47 = vld [vmem:[#allocation7 + $0x5d0] sm:$0xff]  }
 0x1d1   :  { %7054 = vmatpush3.bf16.msra.mxu0 %v7669_v3  ;;  %v7712_v3 = vld [vmem:[#allocation7 + $0x4e8] sm:$0xff]  }
 0x1d2   :  { %7055 = vmatprep.subr.bf16.mxu0 %v7671_v6  ;;  %7074 = vmatpush3.bf16.msra.mxu1 %v7670_v5  ;;  %v7711_v5 = vld [vmem:[#allocation7 + $0x518] sm:$0xff]   ;;  %v7713_v6 = vld [vmem:[#allocation7 + $0x560] sm:$0xff]  }
 0x1d3   :  { %7075 = vmatprep.subr.bf16.mxu1 %v7672_v7  ;;  %v7714_v7 = vld [vmem:[#allocation7 + $0x4a8] sm:$0xff]  }
 0x1d5   :  { %7056 = vmatpush3.bf16.msra.mxu0 %v7673_v8  ;;  %v7716_v8 = vld [vmem:[#allocation7 + $0x4f0] sm:$0xff]  }
 0x1d6   :  { %7057 = vmatprep.subr.bf16.mxu0 %v7675_v9  ;;  %7076 = vmatpush3.bf16.msra.mxu1 %v7674_v4  ;;  %v7715_v4 = vld [vmem:[#allocation7 + $0x520] sm:$0xff]   ;;  %v7717_v9 = vld [vmem:[#allocation7 + $0x568] sm:$0xff]  }
 0x1d7   :  { %7077 = vmatprep.subr.bf16.mxu1 %v7676_v10  ;;  %v7718_v10 = vld [vmem:[#allocation7 + $0x4b0] sm:$0xff]  }
 0x1d9   :  { %7058 = vmatpush3.bf16.msra.mxu0 %v7677_v11  ;;  %v7720_v11 = vld [vmem:[#allocation7 + $0x4f8] sm:$0xff]  }
 0x1da   :  { %7059 = vmatprep.subr.bf16.mxu0 %v7679_v14  ;;  %7078 = vmatpush3.bf16.msra.mxu1 %v7678_v12  ;;  %v7719_v14 = vld [vmem:[#allocation7 + $0x528] sm:$0xff]  }
 0x1db   :  { %7079 = vmatprep.subr.bf16.mxu1 %v7680_v15 }
 0x1dd   :  { %7060 = vmatpush3.bf16.msra.mxu0 %v7681_v16  ;;  %v7721_v16 = vld [vmem:[#allocation7 + $0x570] sm:$0xff]  }
 0x1de   :  { %7061 = vmatprep.subr.bf16.mxu0 %v7683_v18  ;;  %7080 = vmatpush3.bf16.msra.mxu1 %v7682_v17 }
 0x1df   :  { %v6771_v21 = vpop.f32.mrb[20].mxu0  ;;  %7081 = vmatprep.subr.bf16.mxu1 %v7684_v13 }
 0x1e0   :  { %v6772_v23 = vpop.f32.mrb[21].mxu0  ;;  %v6793_v27 = vpop.f32.mrb[20].mxu1 }
 0x1e1   :  { %v6773_v25 = vadd.f32 %v6772_v23, %v6771_v21  ;;  %v6774_v26 = vpop.f32.mrb[22].mxu0  ;;  %7062 = vmatpush3.bf16.msra.mxu0 %v7685_v19  ;;  %v6794_v31 = vpop.f32.mrb[21].mxu1  ;;  %v7722_v19 = vld [vmem:[#allocation7 + $0x4b8] sm:$0xff]   ;;  %v7723_v23 = vld [vmem:[#allocation7 + $0x530] sm:$0xff]  }
 0x1e2   :  { %v6775_v30 = vpop.f32.mrb[23].mxu0  ;;  %v6795_v36 = vadd.f32 %v6794_v31, %v6793_v27  ;;  %7063 = vmatprep.subr.bf16.mxu0 %v7687_v22  ;;  %v6796_v38 = vpop.f32.mrb[22].mxu1  ;;  %7082 = vmatpush3.bf16.msra.mxu1 %v7686_v20  ;;  %v73_v20 = vld [vmem:[#allocation2 + $0x28] sm:$0xff] }
 0x1e3   :  { %v3566_v34 = vadd.f32 %v6773_v25, %v8076_v51  ;;  %v6797_v41 = vpop.f32.mrb[23].mxu1  ;;  %7083 = vmatprep.subr.bf16.mxu1 %v7688_v24  ;;  %v7694_v51 = vld [vmem:[#allocation7 + $0x438] sm:$0xff]   ;;  %v7726_v24 = vld [vmem:[#allocation7 + $0x5c0] sm:$0xff]   ;;  %v176_v25 = vrot.slane %v73_v20, %v8011_v35  ;;  %v169_v26 = vcombine.high %v73_v20, %v73_v20 }
 0x1e4   :  { %v7725_v30 = vld [vmem:[#allocation7 + $0x578] sm:$0xff]  }
 0x1e5   :  { %v8087_v43 = vadd.f32 %v6795_v36, %v3566_v34  ;;  %7064 = vmatpush3.bf16.msra.mxu0 %v7689_v28  ;;  %v184_v31 = vcombine.high %v176_v25, %v176_v25  ;;  %v8098_v33 = vrot.slane %v169_v26, %v8011_v35  ;;  %v7727_v36 = vld [vmem:[#allocation7 + $0x538] sm:$0xff]   ;;  %v7761_v26 = vld [vmem:[#allocation7 + $0x680] sm:$0xff]  }
 0x1e6   :  { %7093 = vmatprep.subr.bf16.mxu0 %v7693_v37  ;;  %7084 = vmatpush3.bf16.msra.mxu1 %v7690_v39  ;;  %v7728_v37 = vld [vmem:[#allocation7 + $0x580] sm:$0xff]  }
 0x1e7   :  { %7085 = vmatprep.subr.bf16.mxu1 %v7692_v45  ;;  %v273_v39 = vpack.c.bf16 %v184_v31, %v184_v31  ;;  %v185_v41 = vcombine.high %v8098_v33, %v8098_v33  ;;  %v7732_v45 = vld [vmem:[#allocation7 + $0x600] sm:$0xff]   ;;  %v7760_v31 = vld [vmem:[#allocation7 + $0x638] sm:$0xff]  }
 0x1e8   :  { %5660 = vmatmul.mubr.bf16.vlgmr.msra.gmra.mrb[48].mxu0 %v266_v44 }
 0x1e9   :  { %7094 = vmatpush3.bf16.msra.mxu0 %v7695_v46  ;;  %5739 = vmatprep.mubr.bf16.mxu0 %v271_v52  ;;  %v275_v44 = vpack.c.bf16 %v185_v41, %v185_v41  ;;  %v272_v46 = vpack.c.bf16 %v176_v25, %v176_v25  ;;  %v7737_v52 = vld [vmem:[#allocation7 + $0x5d8] sm:$0xff]  }
 0x1ea   :  { %7095 = vmatprep.subr.bf16.mxu0 %v7696_v49  ;;  %7086 = vmatpush3.bf16.msra.mxu1 %v7694_v51  ;;  %v7735_v49 = vld [vmem:[#allocation7 + $0x590] sm:$0xff]   ;;  %v7736_v51 = vld [vmem:[#allocation7 + $0x608] sm:$0xff]   ;;  %v7770_v41 = vld [vmem:[#allocation7 + $0x6d8] sm:$0xff]  }
 0x1eb   :  { %7115 = vmatprep.subr.bf16.mxu1 %v7697_v53  ;;  %v7738_v53 = vld [vmem:[#allocation7 + $0x650] sm:$0xff]  }
 0x1ed   :  { %7096 = vmatpush3.bf16.msra.mxu0 %v7698_v54  ;;  %5700 = vmatmul.mubr.bf16.vlgmr.msra.gmra.mrb[48].mxu1 %v268_v50  ;;  %v7739_v54 = vld [vmem:[#allocation7 + $0x598] sm:$0xff]   ;;  %v7740_v50 = vld [vmem:[#allocation7 + $0x610] sm:$0xff]  }
 0x1ee   :  { %7097 = vmatprep.subr.bf16.mxu0 %v7700_v55  ;;  %7116 = vmatpush3.bf16.msra.mxu1 %v7699_v56  ;;  %v7741_v55 = vld [vmem:[#allocation7 + $0x5e0] sm:$0xff]   ;;  %v7742_v56 = vld [vmem:[#allocation7 + $0x658] sm:$0xff]  }
 0x1ef   :  { %7117 = vmatprep.subr.bf16.mxu1 %v7701_v57  ;;  %5779 = vmatprep.mubr.bf16.mxu1 %v273_v39  ;;  %v7743_v57 = vld [vmem:[#allocation7 + $0x5a0] sm:$0xff]   ;;  %v7767_v39 = vld [vmem:[#allocation7 + $0x748] sm:$0xff]  }
 0x1f1   :  { %7098 = vmatpush3.bf16.msra.mxu0 %v7702_v58  ;;  %v7744_v58 = vld [vmem:[#allocation7 + $0x618] sm:$0xff]  }
 0x1f2   :  { %7099 = vmatprep.subr.bf16.mxu0 %v7704_v60  ;;  %7118 = vmatpush3.bf16.msra.mxu1 %v7703_v61  ;;  %v7745_v60 = vld [vmem:[#allocation7 + $0x5e8] sm:$0xff]   ;;  %v7746_v61 = vld [vmem:[#allocation7 + $0x660] sm:$0xff]  }
 0x1f3   :  { %7119 = vmatprep.subr.bf16.mxu1 %v7705_v62  ;;  %v7747_v62 = vld [vmem:[#allocation7 + $0x5a8] sm:$0xff]  }
 0x1f5   :  { %7100 = vmatpush3.bf16.msra.mxu0 %v7706_v63  ;;  %v7748_v63 = vld [vmem:[#allocation7 + $0x620] sm:$0xff]  }
 0x1f6   :  { %7101 = vmatprep.subr.bf16.mxu0 %v7708_v59  ;;  %7120 = vmatpush3.bf16.msra.mxu1 %v7707_v0  ;;  %v7749_v59 = vld [vmem:[#allocation7 + $0x5f0] sm:$0xff]   ;;  %v7750_v0 = vld [vmem:[#allocation7 + $0x668] sm:$0xff]  }
 0x1f7   :  { %7121 = vmatprep.subr.bf16.mxu1 %v7709_v1  ;;  %v7751_v1 = vld [vmem:[#allocation7 + $0x5b0] sm:$0xff]  }
 0x1f9   :  { %7102 = vmatpush3.bf16.msra.mxu0 %v7710_v2  ;;  %v7752_v2 = vld [vmem:[#allocation7 + $0x628] sm:$0xff]  }
 0x1fa   :  { %7103 = vmatprep.subr.bf16.mxu0 %v7712_v3  ;;  %7122 = vmatpush3.bf16.msra.mxu1 %v7711_v5  ;;  %v7753_v3 = vld [vmem:[#allocation7 + $0x5f8] sm:$0xff]  }
 0x1fb   :  { %7123 = vmatprep.subr.bf16.mxu1 %v7713_v6  ;;  %v7754_v6 = vld [vmem:[#allocation7 + $0x670] sm:$0xff]  }
 0x1fd   :  { %7104 = vmatpush3.bf16.msra.mxu0 %v7714_v7 }
 0x1fe   :  { %7105 = vmatprep.subr.bf16.mxu0 %v7716_v8  ;;  %7124 = vmatpush3.bf16.msra.mxu1 %v7715_v4  ;;  %v7755_v8 = vld [vmem:[#allocation7 + $0x5b8] sm:$0xff]  }
 0x1ff   :  { %v6815_v12 = vpop.f32.mrb[24].mxu0  ;;  %7125 = vmatprep.subr.bf16.mxu1 %v7717_v9 }
 0x200   :  { %v6816_v15 = vpop.f32.mrb[25].mxu0  ;;  %v6837_v13 = vpop.f32.mrb[24].mxu1 }
 0x201   :  { %v6817_v17 = vadd.f32 %v6816_v15, %v6815_v12  ;;  %v6818_v18 = vpop.f32.mrb[26].mxu0  ;;  %7106 = vmatpush3.bf16.msra.mxu0 %v7718_v10  ;;  %v6838_v22 = vpop.f32.mrb[25].mxu1  ;;  %v74_v12 = vld [vmem:[#allocation2 + $0x30] sm:$0xff] }
 0x202   :  { %v6819_v21 = vpop.f32.mrb[27].mxu0  ;;  %7107 = vmatprep.subr.bf16.mxu0 %v7720_v11  ;;  %7126 = vmatpush3.bf16.msra.mxu1 %v7719_v14  ;;  %v6839_v28 = vadd.f32 %v6838_v22, %v6837_v13  ;;  %v6840_v32 = vpop.f32.mrb[26].mxu1  ;;  %v7759_v11 = vld [vmem:[#allocation7 + $0x6c0] sm:$0xff]   ;;  %v7758_v22 = vld [vmem:[#allocation7 + $0x678] sm:$0xff]  }
 0x203   :  { %v3646_v27 = vadd.f32 %v6817_v17, %v8087_v43  ;;  %7127 = vmatprep.subr.bf16.mxu1 %v7721_v16  ;;  %v6841_v38 = vpop.f32.mrb[27].mxu1  ;;  %v7731_v43 = vld [vmem:[#allocation7 + $0x588] sm:$0xff]   ;;  %v193_v16 = vrot.slane %v74_v12, %v8011_v35  ;;  %v186_v17 = vcombine.high %v74_v12, %v74_v12  ;;  %v274_v21 = vpack.c.bf16 %v8098_v33, %v8098_v33  ;;  %v7763_v32 = vld [vmem:[#allocation7 + $0x740] sm:$0xff]   ;;  %v7791_v12 = vld [vmem:[#allocation7 + $0x778] sm:$0xff]  }
 0x204   :  { %v7765_v38 = vld [vmem:[#allocation7 + $0x700] sm:$0xff]  }
 0x205   :  { %v8100_v34 = vadd.f32 %v6839_v28, %v3646_v27  ;;  %7108 = vmatpush3.bf16.msra.mxu0 %v7722_v19  ;;  %v7756_v19 = vld [vmem:[#allocation7 + $0x630] sm:$0xff]   ;;  %v8109_v25 = vrot.slane %v186_v17, %v8011_v35 }
 0x206   :  { %7137 = vmatprep.subr.bf16.mxu0 %v7726_v24  ;;  %7128 = vmatpush3.bf16.msra.mxu1 %v7723_v23  ;;  %v201_v23 = vcombine.high %v193_v16, %v193_v16 }
 0x207   :  { %7129 = vmatprep.subr.bf16.mxu1 %v7725_v30  ;;  %v202_v30 = vcombine.high %v8109_v25, %v8109_v25 }
 0x208   :  { %5740 = vmatmul.mubr.bf16.vlgmr.msra.gmra.mrb[52].mxu0 %v270_v29  ;;  %v277_v28 = vpack.c.bf16 %v201_v23, %v201_v23  ;;  %v7762_v29 = vld [vmem:[#allocation7 + $0x6c8] sm:$0xff]  }
 0x209   :  { %7138 = vmatpush3.bf16.msra.mxu0 %v7728_v37  ;;  %5819 = vmatprep.mubr.bf16.mxu0 %v275_v44  ;;  %v279_v33 = vpack.c.bf16 %v202_v30, %v202_v30  ;;  %v7766_v37 = vld [vmem:[#allocation7 + $0x6d0] sm:$0xff]   ;;  %v7772_v44 = vld [vmem:[#allocation7 + $0x698] sm:$0xff]   ;;  %v7803_v30 = vld [vmem:[#allocation7 + $0x7e8] sm:$0xff]  }
 0x20a   :  { %7139 = vmatprep.subr.bf16.mxu0 %v7729_v40  ;;  %7130 = vmatpush3.bf16.msra.mxu1 %v7727_v36  ;;  %v276_v36 = vpack.c.bf16 %v193_v16, %v193_v16  ;;  %v7768_v40 = vld [vmem:[#allocation7 + $0x690] sm:$0xff]   ;;  %v7794_v16 = vld [vmem:[#allocation7 + $0x780] sm:$0xff]  }
 0x20b   :  { %7159 = vmatprep.subr.bf16.mxu1 %v7730_v42  ;;  %v7769_v42 = vld [vmem:[#allocation7 + $0x708] sm:$0xff]  }
 0x20d   :  { %7140 = vmatpush3.bf16.msra.mxu0 %v7731_v43  ;;  %5780 = vmatmul.mubr.bf16.vlgmr.msra.gmra.mrb[52].mxu1 %v272_v46  ;;  %v7771_v43 = vld [vmem:[#allocation7 + $0x750] sm:$0xff]  }
 0x20e   :  { %7141 = vmatprep.subr.bf16.mxu0 %v7733_v47  ;;  %7160 = vmatpush3.bf16.msra.mxu1 %v7732_v45  ;;  %v7774_v45 = vld [vmem:[#allocation7 + $0x6e0] sm:$0xff]   ;;  %v7773_v46 = vld [vmem:[#allocation7 + $0x710] sm:$0xff]   ;;  %v7775_v47 = vld [vmem:[#allocation7 + $0x758] sm:$0xff]  }
 0x20f   :  { %7161 = vmatprep.subr.bf16.mxu1 %v7734_v48  ;;  %5859 = vmatprep.mubr.bf16.mxu1 %v277_v28  ;;  %v7776_v48 = vld [vmem:[#allocation7 + $0x6a0] sm:$0xff]  }
 0x210   :  { %v7801_v28 = vld [vmem:[#allocation7 + $0x7e0] sm:$0xff]  }
 0x211   :  { %7142 = vmatpush3.bf16.msra.mxu0 %v7735_v49  ;;  %v7778_v49 = vld [vmem:[#allocation7 + $0x6e8] sm:$0xff]  }
 0x212   :  { %7143 = vmatprep.subr.bf16.mxu0 %v7737_v52  ;;  %7162 = vmatpush3.bf16.msra.mxu1 %v7736_v51  ;;  %v7777_v51 = vld [vmem:[#allocation7 + $0x718] sm:$0xff]   ;;  %v7779_v52 = vld [vmem:[#allocation7 + $0x760] sm:$0xff]  }
 0x213   :  { %7163 = vmatprep.subr.bf16.mxu1 %v7738_v53  ;;  %v7780_v53 = vld [vmem:[#allocation7 + $0x6a8] sm:$0xff]  }
 0x215   :  { %7144 = vmatpush3.bf16.msra.mxu0 %v7739_v54  ;;  %v7782_v54 = vld [vmem:[#allocation7 + $0x6f0] sm:$0xff]  }
 0x216   :  { %7145 = vmatprep.subr.bf16.mxu0 %v7741_v55  ;;  %7164 = vmatpush3.bf16.msra.mxu1 %v7740_v50  ;;  %v7781_v55 = vld [vmem:[#allocation7 + $0x720] sm:$0xff]  }
 0x217   :  { %7165 = vmatprep.subr.bf16.mxu1 %v7742_v56 }
 0x219   :  { %7146 = vmatpush3.bf16.msra.mxu0 %v7743_v57 }
 0x21a   :  { %7147 = vmatprep.subr.bf16.mxu0 %v7745_v60  ;;  %7166 = vmatpush3.bf16.msra.mxu1 %v7744_v58  ;;  %v7783_v58 = vld [vmem:[#allocation7 + $0x768] sm:$0xff]  }
 0x21b   :  { %7167 = vmatprep.subr.bf16.mxu1 %v7746_v61  ;;  %v7784_v61 = vld [vmem:[#allocation7 + $0x6b0] sm:$0xff]  }
 0x21d   :  { %7148 = vmatpush3.bf16.msra.mxu0 %v7747_v62 }
 0x21e   :  { %7149 = vmatprep.subr.bf16.mxu0 %v7749_v59  ;;  %7168 = vmatpush3.bf16.msra.mxu1 %v7748_v63  ;;  %v7786_v63 = vld [vmem:[#allocation7 + $0x6f8] sm:$0xff]   ;;  %v7785_v59 = vld [vmem:[#allocation7 + $0x728] sm:$0xff]  }
 0x21f   :  { %v6859_v5 = vpop.f32.mrb[28].mxu0  ;;  %7169 = vmatprep.subr.bf16.mxu1 %v7750_v0  ;;  %v7787_v0 = vld [vmem:[#allocation7 + $0x770] sm:$0xff]  }
 0x220   :  { %v6860_v7 = vpop.f32.mrb[29].mxu0  ;;  %v6881_v10 = vpop.f32.mrb[28].mxu1 }
 0x221   :  { %v6861_v4 = vadd.f32 %v6860_v7, %v6859_v5  ;;  %v6862_v9 = vpop.f32.mrb[30].mxu0  ;;  %7150 = vmatpush3.bf16.msra.mxu0 %v7751_v1  ;;  %v6882_v15 = vpop.f32.mrb[29].mxu1  ;;  %v7792_v5 = vld [vmem:[#allocation7 + $0x7c0] sm:$0xff]  }
 0x222   :  { %v6863_v14 = vpop.f32.mrb[31].mxu0  ;;  %7151 = vmatprep.subr.bf16.mxu0 %v7753_v3  ;;  %7170 = vmatpush3.bf16.msra.mxu1 %v7752_v2  ;;  %v6883_v13 = vadd.f32 %v6882_v15, %v6881_v10  ;;  %v6884_v20 = vpop.f32.mrb[30].mxu1  ;;  %v7788_v2 = vld [vmem:[#allocation7 + $0x6b8] sm:$0xff]  }
 0x223   :  { %v3726_v18 = vadd.f32 %v6861_v4, %v8100_v34  ;;  %7171 = vmatprep.subr.bf16.mxu1 %v7754_v6  ;;  %v6885_v24 = vpop.f32.mrb[31].mxu1  ;;  %v7764_v34 = vld [vmem:[#allocation7 + $0x688] sm:$0xff]   ;;  %v75_v6 = vld [vmem:[#allocation2 + $0x38] sm:$0xff] }
 0x224   :  { %v210_v4 = vrot.slane %v75_v6, %v8011_v35  ;;  %v203_v10 = vcombine.high %v75_v6, %v75_v6 }
 0x225   :  { %7152 = vmatpush3.bf16.msra.mxu0 %v7755_v8  ;;  %v3766_v27 = vadd.f32 %v6883_v13, %v3726_v18  ;;  %v7789_v8 = vld [vmem:[#allocation7 + $0x730] sm:$0xff]   ;;  %v7795_v13 = vld [vmem:[#allocation7 + $0x7c8] sm:$0xff]  }
 0x226   :  { %7181 = vmatprep.subr.bf16.mxu0 %v7759_v11  ;;  %7172 = vmatpush3.bf16.msra.mxu1 %v7756_v19  ;;  %v278_v11 = vpack.c.bf16 %v8109_v25, %v8109_v25  ;;  %v218_v17 = vcombine.high %v210_v4, %v210_v4  ;;  %v217_v18 = vrot.slane %v203_v10, %v8011_v35  ;;  %v7793_v19 = vld [vmem:[#allocation7 + $0x738] sm:$0xff]   ;;  %v7797_v25 = vld [vmem:[#allocation7 + $0x7d0] sm:$0xff]  }
 0x227   :  { %7173 = vmatprep.subr.bf16.mxu1 %v7758_v22  ;;  %v7796_v22 = vld [vmem:[#allocation7 + $0x788] sm:$0xff]   ;;  %v280_v24 = vpack.c.bf16 %v210_v4, %v210_v4  ;;  %v7799_v35 = vld [vmem:[#allocation7 + $0x7d8] sm:$0xff]  }
 0x228   :  { %5820 = vmatmul.mubr.bf16.vlgmr.msra.gmra.mrb[56].mxu0 %v274_v21  ;;  %v281_v20 = vpack.c.bf16 %v218_v17, %v218_v17  ;;  %v219_v21 = vcombine.high %v217_v18, %v217_v18 }
 0x229   :  { %7182 = vmatpush3.bf16.msra.mxu0 %v7761_v26  ;;  %5899 = vmatprep.mubr.bf16.mxu0 %v279_v33  ;;  %v7798_v26 = vld [vmem:[#allocation7 + $0x790] sm:$0xff]  }
 0x22a   :  { %7183 = vmatprep.subr.bf16.mxu0 %v7762_v29  ;;  %7174 = vmatpush3.bf16.msra.mxu1 %v7760_v31  ;;  %v283_v23 = vpack.c.bf16 %v219_v21, %v219_v21  ;;  %v7802_v29 = vld [vmem:[#allocation7 + $0x7a0] sm:$0xff]   ;;  %v7804_v31 = vld [vmem:[#allocation7 + $0x7a8] sm:$0xff]  }
 0x22b   :  { %7203 = vmatprep.subr.bf16.mxu1 %v7763_v32  ;;  %v7805_v32 = vld [vmem:[#allocation7 + $0x7f0] sm:$0xff]  }
 0x22d   :  { %7184 = vmatpush3.bf16.msra.mxu0 %v7764_v34  ;;  %5860 = vmatmul.mubr.bf16.vlgmr.msra.gmra.mrb[56].mxu1 %v276_v36 }
 0x22e   :  { %7185 = vmatprep.subr.bf16.mxu0 %v7766_v37  ;;  %7204 = vmatpush3.bf16.msra.mxu1 %v7765_v38  ;;  %v7806_v38 = vld [vmem:[#allocation7 + $0x7b0] sm:$0xff]  }
 0x22f   :  { %7205 = vmatprep.subr.bf16.mxu1 %v7767_v39  ;;  %5939 = vmatprep.mubr.bf16.mxu1 %v281_v20 }
 0x231   :  { %7186 = vmatpush3.bf16.msra.mxu0 %v7768_v40  ;;  %v7807_v40 = vld [vmem:[#allocation7 + $0x7f8] sm:$0xff]  }
 0x232   :  { %7187 = vmatprep.subr.bf16.mxu0 %v7770_v41  ;;  %7206 = vmatpush3.bf16.msra.mxu1 %v7769_v42 }
 0x233   :  { %7207 = vmatprep.subr.bf16.mxu1 %v7771_v43  ;;  %v7808_v43 = vld [vmem:[#allocation7 + $0x7b8] sm:$0xff]  }
 0x235   :  { %7188 = vmatpush3.bf16.msra.mxu0 %v7772_v44 }
 0x236   :  { %7189 = vmatprep.subr.bf16.mxu0 %v7774_v45  ;;  %7208 = vmatpush3.bf16.msra.mxu1 %v7773_v46 }
 0x237   :  { %7209 = vmatprep.subr.bf16.mxu1 %v7775_v47  ;;  %v282_v47 = vpack.c.bf16 %v217_v18, %v217_v18 }
 0x239   :  { %7190 = vmatpush3.bf16.msra.mxu0 %v7776_v48 }
 0x23a   :  { %7191 = vmatprep.subr.bf16.mxu0 %v7778_v49  ;;  %7210 = vmatpush3.bf16.msra.mxu1 %v7777_v51 }
 0x23b   :  { %v3805_v50 = vpop.f32.mrb[32].mxu0  ;;  %7211 = vmatprep.subr.bf16.mxu1 %v7779_v52 }
 0x23c   :  { %v3806_v56 = vadd.f32 %v3805_v50, %v3766_v27  ;;  %v7263_v57 = vpop.f32.mrb[33].mxu0  ;;  %v7800_v27 = vld [vmem:[#allocation7 + $0x798] sm:$0xff]  }
 0x23d   :  { %v3808_v60 = vpop.f32.mrb[34].mxu0  ;;  %7192 = vmatpush3.bf16.msra.mxu0 %v7780_v53 }
 0x23e   :  { %v7264_v62 = vpop.f32.mrb[35].mxu0  ;;  %7193 = vmatprep.subr.bf16.mxu0 %v7782_v54  ;;  %7212 = vmatpush3.bf16.msra.mxu1 %v7781_v55 }
 0x23f   :  { %7213 = vmatprep.subr.bf16.mxu1 %v7783_v58 }
 0x240   :  { %v6911_v1 = vpop.f32.mrb[32].mxu1 }
 0x241   :  { %7194 = vmatpush3.bf16.msra.mxu0 %v7784_v61  ;;  %v6912_v3 = vpop.f32.mrb[33].mxu1 }
 0x242   :  { %7195 = vmatprep.subr.bf16.mxu0 %v7786_v63  ;;  %v6913_v7 = vadd.f32 %v6912_v3, %v6911_v1  ;;  %7214 = vmatpush3.bf16.msra.mxu1 %v7785_v59  ;;  %v6914_v9 = vpop.f32.mrb[34].mxu1 }
 0x243   :  { %7215 = vmatprep.subr.bf16.mxu1 %v7787_v0  ;;  %v6915_v14 = vpop.f32.mrb[35].mxu1 }
 0x244   :  { %v5382_v15 = vadd.f32 %v6913_v7, %v3806_v56 }
 0x245   :  { %7196 = vmatpush3.bf16.msra.mxu0 %v7788_v2 }
 0x246   :  { %7225 = vmatprep.subr.bf16.mxu0 %v7792_v5  ;;  %7216 = vmatpush3.bf16.msra.mxu1 %v7789_v8 }
 0x247   :  { %7217 = vmatprep.subr.bf16.mxu1 %v7791_v12 }
 0x248   :  { %5900 = vmatmul.mubr.bf16.vlgmr.msra.gmra.mrb[60].mxu0 %v278_v11 }
 0x249   :  { %7226 = vmatpush3.bf16.msra.mxu0 %v7794_v16  ;;  %5979 = vmatprep.mubr.bf16.mxu0 %v283_v23 }
 0x24a   :  { %7227 = vmatprep.subr.bf16.mxu0 %v7795_v13  ;;  %7218 = vmatpush3.bf16.msra.mxu1 %v7793_v19 }
 0x24d   :  { %7228 = vmatpush3.bf16.msra.mxu0 %v7796_v22  ;;  %5940 = vmatmul.mubr.bf16.vlgmr.msra.gmra.mrb[60].mxu1 %v280_v24 }
 0x24e   :  { %7229 = vmatprep.subr.bf16.mxu0 %v7797_v25 }
 0x251   :  { %7230 = vmatpush3.bf16.msra.mxu0 %v7798_v26 }
 0x252   :  { %7231 = vmatprep.subr.bf16.mxu0 %v7799_v35 }
 0x255   :  { %7232 = vmatpush3.bf16.msra.mxu0 %v7800_v27 }
 0x256   :  { %7233 = vmatprep.subr.bf16.mxu0 %v7801_v28 }
 0x259   :  { %7234 = vmatpush3.bf16.msra.mxu0 %v7802_v29 }
 0x25a   :  { %7235 = vmatprep.subr.bf16.mxu0 %v7803_v30 }
 0x25b   :  { %v6933_v33 = vpop.f32.mrb[36].mxu0 }
 0x25c   :  { %v6934_v34 = vpop.f32.mrb[37].mxu0 }
 0x25d   :  { %v6935_v36 = vadd.f32 %v6934_v34, %v6933_v33  ;;  %v6936_v37 = vpop.f32.mrb[38].mxu0  ;;  %7236 = vmatpush3.bf16.msra.mxu0 %v7804_v31 }
 0x25e   :  { %v6937_v39 = vpop.f32.mrb[39].mxu0  ;;  %7237 = vmatprep.subr.bf16.mxu0 %v7805_v32 }
 0x25f   :  { %v5422_v41 = vadd.f32 %v6935_v36, %v5382_v15 }
 0x260   :  { %v6955_v42 = vpop.f32.mrb[36].mxu1 }
 0x261   :  { %7238 = vmatpush3.bf16.msra.mxu0 %v7806_v38  ;;  %v6956_v44 = vpop.f32.mrb[37].mxu1 }
 0x262   :  { %7239 = vmatprep.subr.bf16.mxu0 %v7807_v40  ;;  %v6957_v45 = vadd.f32 %v6956_v44, %v6955_v42  ;;  %v6958_v46 = vpop.f32.mrb[38].mxu1 }
 0x263   :  { %v6959_v48 = vpop.f32.mrb[39].mxu1 }
 0x264   :  { %v5462_v49 = vadd.f32 %v6957_v45, %v5422_v41 }
 0x265   :  { %7240 = vmatpush3.bf16.msra.mxu0 %v7808_v43 }
 0x268   :  { %5980 = vmatmul.mubr.bf16.vlgmr.msra.gmra.mrb[64].mxu0 %v282_v47 }
 0x27b   :  { %v6977_v51 = vpop.f32.mrb[40].mxu0 }
 0x27c   :  { %v6978_v52 = vpop.f32.mrb[41].mxu0 }
 0x27d   :  { %v6979_v53 = vadd.f32 %v6978_v52, %v6977_v51  ;;  %v6980_v54 = vpop.f32.mrb[42].mxu0 }
 0x27e   :  { %v6981_v50 = vpop.f32.mrb[43].mxu0 }
 0x27f   :  { %v5502_v55 = vadd.f32 %v6979_v53, %v5462_v49 }
 0x280   :  { %v6999_v56 = vpop.f32.mrb[40].mxu1 }
 0x281   :  { %v7000_v57 = vpop.f32.mrb[41].mxu1 }
 0x282   :  { %v7001_v58 = vadd.f32 %v7000_v57, %v6999_v56  ;;  %v7002_v60 = vpop.f32.mrb[42].mxu1 }
 0x283   :  { %v7003_v61 = vpop.f32.mrb[43].mxu1 }
 0x284   :  { %v5542_v62 = vadd.f32 %v7001_v58, %v5502_v55 }
 0x29b   :  { %v7021_v63 = vpop.f32.mrb[44].mxu0 }
 0x29c   :  { %v7022_v59 = vpop.f32.mrb[45].mxu0 }
 0x29d   :  { %v7023_v0 = vadd.f32 %v7022_v59, %v7021_v63  ;;  %v7024_v1 = vpop.f32.mrb[46].mxu0  ;;  %v6534_v59 = vld [vmem:[#allocation8] ss:$0 sm:$0xff] }
 0x29e   :  { %v7025_v2 = vpop.f32.mrb[47].mxu0 }
 0x29f   :  { %v5582_v3 = vadd.f32 %v7023_v0, %v5542_v62 }
 0x2a0   :  { %v7043_v5 = vpop.f32.mrb[44].mxu1 }
 0x2a1   :  { %v7044_v6 = vpop.f32.mrb[45].mxu1 }
 0x2a2   :  { %v7045_v7 = vadd.f32 %v7044_v6, %v7043_v5  ;;  %v7046_v8 = vpop.f32.mrb[46].mxu1 }
 0x2a3   :  { %v7047_v4 = vpop.f32.mrb[47].mxu1 }
 0x2a4   :  { %v5622_v9 = vadd.f32 %v7045_v7, %v5582_v3 }
 0x2bb   :  { %v7065_v10 = vpop.f32.mrb[48].mxu0 }
 0x2bc   :  { %v7066_v11 = vpop.f32.mrb[49].mxu0 }
 0x2bd   :  { %v7067_v12 = vadd.f32 %v7066_v11, %v7065_v10  ;;  %v7068_v14 = vpop.f32.mrb[50].mxu0 }
 0x2be   :  { %v7069_v15 = vpop.f32.mrb[51].mxu0 }
 0x2bf   :  { %v5662_v16 = vadd.f32 %v7067_v12, %v5622_v9 }
 0x2c0   :  { %v7087_v17 = vpop.f32.mrb[48].mxu1 }
 0x2c1   :  { %v7088_v18 = vpop.f32.mrb[49].mxu1 }
 0x2c2   :  { %v7089_v13 = vadd.f32 %v7088_v18, %v7087_v17  ;;  %v7090_v19 = vpop.f32.mrb[50].mxu1 }
 0x2c3   :  { %v7091_v20 = vpop.f32.mrb[51].mxu1 }
 0x2c4   :  { %v5702_v21 = vadd.f32 %v7089_v13, %v5662_v16 }
 0x2db   :  { %v7109_v22 = vpop.f32.mrb[52].mxu0 }
 0x2dc   :  { %v7110_v23 = vpop.f32.mrb[53].mxu0 }
 0x2dd   :  { %v7111_v24 = vadd.f32 %v7110_v23, %v7109_v22  ;;  %v7112_v25 = vpop.f32.mrb[54].mxu0 }
 0x2de   :  { %v7113_v26 = vpop.f32.mrb[55].mxu0 }
 0x2df   :  { %v5742_v35 = vadd.f32 %v7111_v24, %v5702_v21 }
 0x2e0   :  { %v7131_v27 = vpop.f32.mrb[52].mxu1 }
 0x2e1   :  { %v7132_v28 = vpop.f32.mrb[53].mxu1 }
 0x2e2   :  { %v7133_v29 = vadd.f32 %v7132_v28, %v7131_v27  ;;  %v7134_v30 = vpop.f32.mrb[54].mxu1 }
 0x2e3   :  { %v7135_v31 = vpop.f32.mrb[55].mxu1 }
 0x2e4   :  { %v5782_v32 = vadd.f32 %v7133_v29, %v5742_v35 }
 0x2fb   :  { %v7153_v33 = vpop.f32.mrb[56].mxu0 }
 0x2fc   :  { %v7154_v34 = vpop.f32.mrb[57].mxu0 }
 0x2fd   :  { %v7155_v36 = vadd.f32 %v7154_v34, %v7153_v33  ;;  %v7156_v37 = vpop.f32.mrb[58].mxu0 }
 0x2fe   :  { %v7157_v38 = vpop.f32.mrb[59].mxu0 }
 0x2ff   :  { %v5822_v39 = vadd.f32 %v7155_v36, %v5782_v32 }
 0x300   :  { %v7175_v40 = vpop.f32.mrb[56].mxu1 }
 0x301   :  { %v7176_v41 = vpop.f32.mrb[57].mxu1 }
 0x302   :  { %v7177_v42 = vadd.f32 %v7176_v41, %v7175_v40  ;;  %v7178_v43 = vpop.f32.mrb[58].mxu1 }
 0x303   :  { %v7179_v44 = vpop.f32.mrb[59].mxu1 }
 0x304   :  { %v5862_v45 = vadd.f32 %v7177_v42, %v5822_v39 }
 0x31b   :  { %v7197_v46 = vpop.f32.mrb[60].mxu0 }
 0x31c   :  { %v7198_v47 = vpop.f32.mrb[61].mxu0 }
 0x31d   :  { %v7199_v48 = vadd.f32 %v7198_v47, %v7197_v46  ;;  %v7200_v49 = vpop.f32.mrb[62].mxu0 }
 0x31e   :  { %v7201_v51 = vpop.f32.mrb[63].mxu0 }
 0x31f   :  { %v5902_v52 = vadd.f32 %v7199_v48, %v5862_v45 }
 0x320   :  { %v7219_v53 = vpop.f32.mrb[60].mxu1 }
 0x321   :  { %v7220_v54 = vpop.f32.mrb[61].mxu1 }
 0x322   :  { %v7221_v50 = vadd.f32 %v7220_v54, %v7219_v53  ;;  %v7222_v55 = vpop.f32.mrb[62].mxu1 }
 0x323   :  { %v7223_v56 = vpop.f32.mrb[63].mxu1 }
 0x324   :  { %v5942_v57 = vadd.f32 %v7221_v50, %v5902_v52 }
 0x33b   :  { %v7241_v58 = vpop.f32.mrb[64].mxu0 }
 0x33c   :  { %v7242_v60 = vpop.f32.mrb[65].mxu0 }
 0x33d   :  { %v7243_v61 = vadd.f32 %v7242_v60, %v7241_v58  ;;  %v7244_v62 = vpop.f32.mrb[66].mxu0 }
 0x33e   :  { %v7245_v63 = vpop.f32.mrb[67].mxu0 }
 0x33f   :  { %v5982_v0 = vadd.f32 %v7243_v61, %v5942_v57 }
 0x341   :  { %v5994_v1 = vadd.f32 %v6534_v59, %v5982_v0 }
 0x343   :  { %5995 = vst [vmem:[#allocation10] sm:$0x3] %v5994_v1 }
 0x344   :  { %7909 = shalt.err (!%p7906_p8)
}
 0x345   :  { %s7910_s14 = scalar_lea.hbm %s8133_s4, 32 }
 0x346   :  { %p7911_p9 = scmp.ne.s32.totalorder %s8133_s4, %s7910_s14  ;;  %p7914_p10 = scmp.lt.u32.totalorder %s7910_s14, %s8133_s4 }
 0x348   :  { %p7916_p11 = pnand %p7914_p10, %p7911_p9 }
 0x34a   :  { %7919 = shalt.err (!%p7916_p11)
}
 0x34b   :  { %6005 = dma.vmem_to_hbm [thread:$0]  %s6003_s1, 32, %s8133_s4, [#allocation4]  }
 0x34c   :  { %7926 = dma.done.wait [#allocation4], 32  }
 0x34d   :  { %7927 = vsyncadd [#allocation4], 4294967264 }
 0x34e   :  { %6009 = vsyncpa [#allocation3], 1 }
 0x34f   :  { %6010 = vsyncpa [#allocation6], 1 }
 0x350   :  { %6011 = vsyncpa [#allocation9], 1 }
 0x351   :  { %6012 = vsyncpa [#allocation4], 1 }

</bundles_post_ra>
